<compile_context>
chip_gen: v7x
topology: tpu7x:2x2x1
jax: 0.10.0
libtpu: 0.0.40
codegen_flags: <defaults>
</compile_context>

<pallas_src>
import jax
import jax.numpy as jnp
from jax.experimental import pallas as pl
from jax.experimental.pallas import tpu as pltpu


_NEG_INF = -1e30                      # f32-safe mask value for padded class columns
_VMEM_BUDGET = 30 * 1024 * 1024       # stay under the 32 MiB scoped-VMEM default (v7x)


def _round_up(n, m):
    return ((n + m - 1) // m) * m


def _choose_bm(B, requested=None):
    if requested is not None:
        return requested
    if B <= 16:
        return 16                                     # latency path: single small tile
    # >=2 grid steps so ("parallel",) actually splits the batch across v7x's two
    # TensorCores; cap at 1024 rows (per-step VMEM stays <4 MiB) which amortizes
    # the per-grid-step overhead far better than 256-row tiles.
    return min(1024, _round_up(pl.cdiv(B, 2), 16))


def _vmem_bytes(bm, d_in, h1, h2, c_pad, out_itemsize, x_bufs=2, w_bufs=1, out_bufs=2):
    x_tile = bm * d_in * 4                            # f32 activations
    out_tile = bm * c_pad * out_itemsize
    weights = 2 * (d_in * h1 + h1 * h2 + h2 * c_pad)  # bf16 weights
    biases = 4 * (h1 + h2 + c_pad)                    # f32 biases
    return x_bufs * x_tile + out_bufs * out_tile + w_bufs * (weights + biases)


def _classifier_kernel(x_ref, w1_ref, b1_ref, w2_ref, b2_ref, w3_ref, b3_ref, o_ref):
    # x arrives as f32 straight from HBM (no wrapper-side cast pass); cast to
    # bf16 right before the MXU matmul.
    x = x_ref[...].astype(jnp.bfloat16)                               # (bm, d_in)

    # fc1 + ReLU  (dropout == identity in eval mode)
    h1 = jnp.dot(x, w1_ref[...], preferred_element_type=jnp.float32) + b1_ref[...]
    h1 = jnp.maximum(h1, 0.0).astype(jnp.bfloat16)

    # fc2 + ReLU
    h2 = jnp.dot(h1, w2_ref[...], preferred_element_type=jnp.float32) + b2_ref[...]
    h2 = jnp.maximum(h2, 0.0).astype(jnp.bfloat16)

    # fc3: padded class columns (col >= num_classes) carry a -1e30 bias and zero
    # weight columns, so they vanish from the softmax with no iota/where masking.
    logits = jnp.dot(h2, w3_ref[...], preferred_element_type=jnp.float32) + b3_ref[...]

    # log_softmax over the class axis, entirely in f32; exp(-1e30 - m) underflows
    # to exactly 0 for the padded columns. Cast only at the final store.
    m = jnp.max(logits, axis=-1, keepdims=True)
    e = jnp.exp(logits - m)
    lse = jnp.log(jnp.sum(e, axis=-1, keepdims=True)) + m
    o_ref[...] = (logits - lse).astype(o_ref.dtype)


def _build_call(bm, b_pad, d_in, h1, h2, c_pad, out_dtype, weight_pipeline_mode):
    if weight_pipeline_mode is None:
        def wspec(shape):
            return pl.BlockSpec(shape, lambda i: (0, 0))
    else:
        def wspec(shape):
            return pl.BlockSpec(shape, lambda i: (0, 0),
                                pipeline_mode=weight_pipeline_mode)
    return pl.pallas_call(
        _classifier_kernel,
        out_shape=jax.ShapeDtypeStruct((b_pad, c_pad), out_dtype),
        grid=(b_pad // bm,),
        in_specs=[
            pl.BlockSpec((bm, d_in), lambda i: (i, 0)),   # activations (f32), tiled
            wspec((d_in, h1)),                            # resident weights / biases
            wspec((1, h1)),
            wspec((h1, h2)),
            wspec((1, h2)),
            wspec((h2, c_pad)),
            wspec((1, c_pad)),
        ],
        out_specs=pl.BlockSpec((bm, c_pad), lambda i: (i, 0)),
        compiler_params=pltpu.CompilerParams(
            dimension_semantics=("parallel",),            # v7x: shard batch over 2 TCs
        ),
    )


def classifier_forward(x_nchw, params, num_classes, *, bm=None,
                       out_dtype=jnp.bfloat16, trim_classes=True):
    """x_nchw: (B, C, H, W) float. Returns (B, num_classes) log-probabilities
    (bf16 by default; pass out_dtype=jnp.float32 for f32)."""
    w1, b1, w2, b2, w3, b3 = params
    B = x_nchw.shape[0]
    x2d = x_nchw.reshape(B, -1).astype(jnp.float32)       # same as torch .view(B, -1)

    d_in = x2d.shape[1]
    h1 = w1.shape[1]
    h2 = w2.shape[1]
    c_pad = w3.shape[1]                                   # class dim padded to 128 lanes

    out_itemsize = jnp.dtype(out_dtype).itemsize
    bm = _choose_bm(B, bm)

    # VMEM guard: resident weights + pipelined x/out tiles must fit the scoped
    # budget on every generation (v7x: 32 MiB default). Shrink bm first.
    while bm > 16 and _vmem_bytes(bm, d_in, h1, h2, c_pad, out_itemsize) > _VMEM_BUDGET:
        bm = max(16, ((bm // 2) // 16) * 16)
    if _vmem_bytes(16, d_in, h1, h2, c_pad, out_itemsize) > _VMEM_BUDGET:
        # TODO(synk): K-tiled fallback (reduction grid over d_in, f32 VMEM
        #             accumulator, pl.when init/finalize) for huge weights.
        raise NotImplementedError(
            "Weights too large to stay VMEM-resident; K-tiled fallback not implemented.")

    b_pad = _round_up(B, bm)
    if b_pad != B:
        x2d = jnp.pad(x2d, ((0, b_pad - B), (0, 0)))

    # bf16 weights (feed the bf16 MXU, halve weight HBM traffic), f32 biases
    # (added after f32 accumulation).
    w1b, w2b, w3b = (w.astype(jnp.bfloat16) for w in (w1, w2, w3))
    b1f, b2f, b3f = (b.astype(jnp.float32) for b in (b1, b2, b3))
    args = (x2d, w1b, b1f, w2b, b2f, w3b, b3f)

    try:
        # Constant-index (resident) weight blocks only need a single VMEM buffer.
        out_padded = _build_call(bm, b_pad, d_in, h1, h2, c_pad, out_dtype,
                                 pl.Buffered(1))(*args)
    except Exception:
        # This jax build does not lower pipeline_mode=Buffered(1) for the
        # top-level pallas_call pipeline; the default double-buffered pipeline
        # is functionally identical (just slightly more VMEM).
        out_padded = _build_call(bm, b_pad, d_in, h1, h2, c_pad, out_dtype,
                                 None)(*args)

    out = out_padded[:B]                                  # row slice (lane-aligned)
    if trim_classes:
        # NOTE: slicing 102 of 128 lanes costs a separate non-lane-aligned XLA
        # copy; latency-sensitive callers can pass trim_classes=False and keep
        # the padded class dim (padded columns hold ~-1e30 log-probs).
        out = out[:, :num_classes]
    return out


def init_params(key, d_in, hidden_size, num_classes):
    """Deterministic parameter init. Weights stored as (in, out) so that
    y = x @ W + b matches torch's x @ weight.T + bias. The class dim is padded
    to a 128-lane multiple with zero weight columns and -1e30 bias entries."""
    h1, h2 = hidden_size
    c_pad = _round_up(num_classes, 128)
    ks = jax.random.split(key, 6)

    def lin(kw, kb, fan_in, fan_out, fan_out_pad=None, pad_bias_value=0.0):
        bound = 1.0 / jnp.sqrt(fan_in)
        w = jax.random.uniform(kw, (fan_in, fan_out), jnp.float32, -bound, bound)
        b = jax.random.uniform(kb, (1, fan_out), jnp.float32, -bound, bound)
        if fan_out_pad is not None and fan_out_pad != fan_out:
            w = jnp.pad(w, ((0, 0), (0, fan_out_pad - fan_out)))
            b = jnp.pad(b, ((0, 0), (0, fan_out_pad - fan_out)),
                        constant_values=pad_bias_value)
        return w, b

    w1, b1 = lin(ks[0], ks[1], d_in, h1)
    w2, b2 = lin(ks[2], ks[3], h1, h2)
    w3, b3 = lin(ks[4], ks[5], h2, num_classes, fan_out_pad=c_pad,
                 pad_bias_value=_NEG_INF)
    return (w1, b1, w2, b2, w3, b3)


def _reference_forward(x_nchw, params, num_classes):
    """Pure-JAX reference with the same bf16 weight/activation rounding."""
    w1, b1, w2, b2, w3, b3 = params
    B = x_nchw.shape[0]
    x = x_nchw.reshape(B, -1).astype(jnp.bfloat16).astype(jnp.float32)
    w1f, w2f, w3f = (w.astype(jnp.bfloat16).astype(jnp.float32) for w in (w1, w2, w3))
    h1 = jnp.maximum(x @ w1f + b1, 0.0).astype(jnp.bfloat16).astype(jnp.float32)
    h2 = jnp.maximum(h1 @ w2f + b2, 0.0).astype(jnp.bfloat16).astype(jnp.float32)
    logits = (h2 @ w3f + b3)[:, :num_classes]
    return jax.nn.log_softmax(logits, axis=-1)


if __name__ == "__main__":
    # Small shapes consistent with the module's forward:
    #   x: (B, C, H, W) flattened to (B, C*H*W); three Linear layers; 102 classes.
    B, C, H, W = 2, 8, 8, 8                  # flattened input size = 512
    hidden_size = [256, 128]
    num_classes = 102

    key = jax.random.PRNGKey(0)
    kx, kp = jax.random.split(key)
    x = jax.random.normal(kx, (B, C, H, W), jnp.float32)
    params = init_params(kp, C * H * W, hidden_size, num_classes)

    out = classifier_forward(x, params, num_classes)
    out = jax.block_until_ready(out)
    assert out.shape == (B, num_classes)
    out_f32 = out.astype(jnp.float32)
    # log_softmax rows should sum (in prob space) to ~1 (bf16 output rounding)
    assert jnp.allclose(jnp.exp(out_f32).sum(axis=1), 1.0, atol=2e-2)
    ref = _reference_forward(x, params, num_classes)
    assert jnp.allclose(out_f32, ref, atol=5e-2, rtol=5e-2)

    # Multi-tile path: >=2 grid steps (exercises batch tiling, padding, and the
    # "parallel" split across TensorCores on v7x).
    B2 = 48
    x2 = jax.random.normal(jax.random.PRNGKey(1), (B2, C, H, W), jnp.float32)
    out2 = jax.block_until_ready(classifier_forward(x2, params, num_classes))
    assert out2.shape == (B2, num_classes)
    ref2 = _reference_forward(x2, params, num_classes)
    assert jnp.allclose(out2.astype(jnp.float32), ref2, atol=5e-2, rtol=5e-2)

    print("KERNEL_OK")
</pallas_src>

<mosaic_0001>
module attributes {stable_mosaic.version = 11 : i64} {
  func.func @_classifier_kernel(%arg0: i32, %arg1: memref<16x512xf32, #tpu.memory_space<vmem>>, %arg2: memref<512x256xbf16, #tpu.memory_space<vmem>>, %arg3: memref<1x256xf32, #tpu.memory_space<vmem>>, %arg4: memref<256x128xbf16, #tpu.memory_space<vmem>>, %arg5: memref<1x128xf32, #tpu.memory_space<vmem>>, %arg6: memref<128x128xbf16, #tpu.memory_space<vmem>>, %arg7: memref<1x128xf32, #tpu.memory_space<vmem>>, %arg8: memref<16x128xbf16, #tpu.memory_space<vmem>>) attributes {dimension_semantics = [#tpu.dimension_semantics<parallel>], iteration_bounds = array<i64: 1>, scalar_prefetch = 0 : i64, scratch_operands = 0 : i64, tpu.core_type = #tpu.core_type<tc>, window_params = [{transform_indices = @transform_0, window_bounds = array<i64: 16, 512>}, {pipeline_mode = #tpu.pipeline_mode<synchronous>, transform_indices = @transform_1, window_bounds = array<i64: 512, 256>}, {pipeline_mode = #tpu.pipeline_mode<synchronous>, transform_indices = @transform_2, window_bounds = array<i64: 1, 256>}, {pipeline_mode = #tpu.pipeline_mode<synchronous>, transform_indices = @transform_3, window_bounds = array<i64: 256, 128>}, {pipeline_mode = #tpu.pipeline_mode<synchronous>, transform_indices = @transform_4, window_bounds = array<i64: 1, 128>}, {pipeline_mode = #tpu.pipeline_mode<synchronous>, transform_indices = @transform_5, window_bounds = array<i64: 128, 128>}, {pipeline_mode = #tpu.pipeline_mode<synchronous>, transform_indices = @transform_6, window_bounds = array<i64: 1, 128>}, {transform_indices = @transform_7, window_bounds = array<i64: 16, 128>}]} {
    %c0 = arith.constant 0 : index
    %c0_0 = arith.constant 0 : index
    %0 = vector.load %arg1[%c0, %c0_0] : memref<16x512xf32, #tpu.memory_space<vmem>>, vector<16x512xf32>
    %1 = arith.truncf %0 : vector<16x512xf32> to vector<16x512xbf16>
    %c0_1 = arith.constant 0 : index
    %c0_2 = arith.constant 0 : index
    %2 = vector.load %arg2[%c0_1, %c0_2] : memref<512x256xbf16, #tpu.memory_space<vmem>>, vector<512x256xbf16>
    %cst = arith.constant dense<0.000000e+00> : vector<16x256xf32>
    %3 = tpu.matmul %1, %2, %cst {dimension_numbers = #tpu.dot_dimension_numbers<[1], [0], [0], [1], [0, 0, 1, 1], [], []>} : vector<16x512xbf16>, vector<512x256xbf16>, vector<16x256xf32> -> vector<16x256xf32>
    %c0_3 = arith.constant 0 : index
    %c0_4 = arith.constant 0 : index
    %4 = vector.load %arg3[%c0_3, %c0_4] : memref<1x256xf32, #tpu.memory_space<vmem>>, vector<1x256xf32>
    %5 = vector.broadcast %4 : vector<1x256xf32> to vector<16x256xf32>
    %6 = arith.addf %3, %5 : vector<16x256xf32>
    %cst_5 = arith.constant 0.000000e+00 : f32
    %7 = vector.broadcast %cst_5 : f32 to vector<16x256xf32>
    %8 = arith.maximumf %6, %7 : vector<16x256xf32>
    %9 = arith.truncf %8 : vector<16x256xf32> to vector<16x256xbf16>
    %c0_6 = arith.constant 0 : index
    %c0_7 = arith.constant 0 : index
    %10 = vector.load %arg4[%c0_6, %c0_7] : memref<256x128xbf16, #tpu.memory_space<vmem>>, vector<256x128xbf16>
    %cst_8 = arith.constant dense<0.000000e+00> : vector<16x128xf32>
    %11 = tpu.matmul %9, %10, %cst_8 {dimension_numbers = #tpu.dot_dimension_numbers<[1], [0], [0], [1], [0, 0, 1, 1], [], []>} : vector<16x256xbf16>, vector<256x128xbf16>, vector<16x128xf32> -> vector<16x128xf32>
    %c0_9 = arith.constant 0 : index
    %c0_10 = arith.constant 0 : index
    %12 = vector.load %arg5[%c0_9, %c0_10] : memref<1x128xf32, #tpu.memory_space<vmem>>, vector<1x128xf32>
    %13 = vector.broadcast %12 : vector<1x128xf32> to vector<16x128xf32>
    %14 = arith.addf %11, %13 : vector<16x128xf32>
    %cst_11 = arith.constant 0.000000e+00 : f32
    %15 = vector.broadcast %cst_11 : f32 to vector<16x128xf32>
    %16 = arith.maximumf %14, %15 : vector<16x128xf32>
    %17 = arith.truncf %16 : vector<16x128xf32> to vector<16x128xbf16>
    %c0_12 = arith.constant 0 : index
    %c0_13 = arith.constant 0 : index
    %18 = vector.load %arg6[%c0_12, %c0_13] : memref<128x128xbf16, #tpu.memory_space<vmem>>, vector<128x128xbf16>
    %cst_14 = arith.constant dense<0.000000e+00> : vector<16x128xf32>
    %19 = tpu.matmul %17, %18, %cst_14 {dimension_numbers = #tpu.dot_dimension_numbers<[1], [0], [0], [1], [0, 0, 1, 1], [], []>} : vector<16x128xbf16>, vector<128x128xbf16>, vector<16x128xf32> -> vector<16x128xf32>
    %c0_15 = arith.constant 0 : index
    %c0_16 = arith.constant 0 : index
    %20 = vector.load %arg7[%c0_15, %c0_16] : memref<1x128xf32, #tpu.memory_space<vmem>>, vector<1x128xf32>
    %21 = vector.broadcast %20 : vector<1x128xf32> to vector<16x128xf32>
    %22 = arith.addf %19, %21 : vector<16x128xf32>
    %cst_17 = arith.constant dense<0xFF800000> : vector<16xf32>
    %23 = vector.multi_reduction <maximumf>, %22, %cst_17 [1] : vector<16x128xf32> to vector<16xf32>
    %24 = vector.shape_cast %23 : vector<16xf32> to vector<16x1xf32>
    %25 = vector.broadcast %24 : vector<16x1xf32> to vector<16x128xf32>
    %26 = arith.subf %22, %25 : vector<16x128xf32>
    %27 = math.exp %26 : vector<16x128xf32>
    %cst_18 = arith.constant dense<0.000000e+00> : vector<16xf32>
    %28 = vector.multi_reduction <add>, %27, %cst_18 [1] : vector<16x128xf32> to vector<16xf32>
    %29 = vector.shape_cast %28 : vector<16xf32> to vector<16x1xf32>
    %30 = math.log %29 : vector<16x1xf32>
    %31 = arith.addf %30, %24 : vector<16x1xf32>
    %32 = vector.broadcast %31 : vector<16x1xf32> to vector<16x128xf32>
    %33 = arith.subf %22, %32 : vector<16x128xf32>
    %34 = arith.truncf %33 : vector<16x128xf32> to vector<16x128xbf16>
    %c0_19 = arith.constant 0 : index
    %c0_20 = arith.constant 0 : index
    %35 = vector.load %arg8[%c0_19, %c0_20] : memref<16x128xbf16, #tpu.memory_space<vmem>>, vector<16x128xbf16>
    tpu.vector_store %arg8[%c0_19, %c0_20], %34 {strides = array<i32>} : memref<16x128xbf16, #tpu.memory_space<vmem>>, vector<16x128xbf16>,
    return
  }
  func.func @transform_0(%arg0: i32) -> (i32, i32) {
    %c0_i32 = arith.constant 0 : i32
    %c0_i32_0 = arith.constant 0 : i32
    return %arg0, %c0_i32 : i32, i32
  }
  func.func @transform_1(%arg0: i32) -> (i32, i32) {
    %c0_i32 = arith.constant 0 : i32
    %c0_i32_0 = arith.constant 0 : i32
    %c0_i32_1 = arith.constant 0 : i32
    return %c0_i32, %c0_i32_0 : i32, i32
  }
  func.func @transform_2(%arg0: i32) -> (i32, i32) {
    %c0_i32 = arith.constant 0 : i32
    %c0_i32_0 = arith.constant 0 : i32
    %c0_i32_1 = arith.constant 0 : i32
    return %c0_i32, %c0_i32_0 : i32, i32
  }
  func.func @transform_3(%arg0: i32) -> (i32, i32) {
    %c0_i32 = arith.constant 0 : i32
    %c0_i32_0 = arith.constant 0 : i32
    %c0_i32_1 = arith.constant 0 : i32
    return %c0_i32, %c0_i32_0 : i32, i32
  }
  func.func @transform_4(%arg0: i32) -> (i32, i32) {
    %c0_i32 = arith.constant 0 : i32
    %c0_i32_0 = arith.constant 0 : i32
    %c0_i32_1 = arith.constant 0 : i32
    return %c0_i32, %c0_i32_0 : i32, i32
  }
  func.func @transform_5(%arg0: i32) -> (i32, i32) {
    %c0_i32 = arith.constant 0 : i32
    %c0_i32_0 = arith.constant 0 : i32
    %c0_i32_1 = arith.constant 0 : i32
    return %c0_i32, %c0_i32_0 : i32, i32
  }
  func.func @transform_6(%arg0: i32) -> (i32, i32) {
    %c0_i32 = arith.constant 0 : i32
    %c0_i32_0 = arith.constant 0 : i32
    %c0_i32_1 = arith.constant 0 : i32
    return %c0_i32, %c0_i32_0 : i32, i32
  }
  func.func @transform_7(%arg0: i32) -> (i32, i32) {
    %c0_i32 = arith.constant 0 : i32
    %c0_i32_0 = arith.constant 0 : i32
    return %arg0, %c0_i32 : i32, i32
  }
}

module attributes {stable_mosaic.version = 11 : i64} {
  func.func @_classifier_kernel(%arg0: i32, %arg1: memref<16x512xf32, #tpu.memory_space<vmem>>, %arg2: memref<512x256xbf16, #tpu.memory_space<vmem>>, %arg3: memref<1x256xf32, #tpu.memory_space<vmem>>, %arg4: memref<256x128xbf16, #tpu.memory_space<vmem>>, %arg5: memref<1x128xf32, #tpu.memory_space<vmem>>, %arg6: memref<128x128xbf16, #tpu.memory_space<vmem>>, %arg7: memref<1x128xf32, #tpu.memory_space<vmem>>, %arg8: memref<16x128xbf16, #tpu.memory_space<vmem>>) attributes {dimension_semantics = [#tpu.dimension_semantics<parallel>], iteration_bounds = array<i64: 1>, scalar_prefetch = 0 : i64, scratch_operands = 0 : i64, tpu.core_type = #tpu.core_type<tc>, window_params = [{transform_indices = @transform_0, window_bounds = array<i64: 16, 512>}, {pipeline_mode = #tpu.pipeline_mode<synchronous>, transform_indices = @transform_1, window_bounds = array<i64: 512, 256>}, {pipeline_mode = #tpu.pipeline_mode<synchronous>, transform_indices = @transform_2, window_bounds = array<i64: 1, 256>}, {pipeline_mode = #tpu.pipeline_mode<synchronous>, transform_indices = @transform_3, window_bounds = array<i64: 256, 128>}, {pipeline_mode = #tpu.pipeline_mode<synchronous>, transform_indices = @transform_4, window_bounds = array<i64: 1, 128>}, {pipeline_mode = #tpu.pipeline_mode<synchronous>, transform_indices = @transform_5, window_bounds = array<i64: 128, 128>}, {pipeline_mode = #tpu.pipeline_mode<synchronous>, transform_indices = @transform_6, window_bounds = array<i64: 1, 128>}, {transform_indices = @transform_7, window_bounds = array<i64: 16, 128>}]} {
    %c0 = arith.constant 0 : index
    %c0_0 = arith.constant 0 : index
    %0 = vector.load %arg1[%c0, %c0_0] : memref<16x512xf32, #tpu.memory_space<vmem>>, vector<16x512xf32>
    %1 = arith.truncf %0 : vector<16x512xf32> to vector<16x512xbf16>
    %c0_1 = arith.constant 0 : index
    %c0_2 = arith.constant 0 : index
    %2 = vector.load %arg2[%c0_1, %c0_2] : memref<512x256xbf16, #tpu.memory_space<vmem>>, vector<512x256xbf16>
    %cst = arith.constant dense<0.000000e+00> : vector<16x256xf32>
    %3 = tpu.matmul %1, %2, %cst {dimension_numbers = #tpu.dot_dimension_numbers<[1], [0], [0], [1], [0, 0, 1, 1], [], []>} : vector<16x512xbf16>, vector<512x256xbf16>, vector<16x256xf32> -> vector<16x256xf32>
    %c0_3 = arith.constant 0 : index
    %c0_4 = arith.constant 0 : index
    %4 = vector.load %arg3[%c0_3, %c0_4] : memref<1x256xf32, #tpu.memory_space<vmem>>, vector<1x256xf32>
    %5 = vector.broadcast %4 : vector<1x256xf32> to vector<16x256xf32>
    %6 = arith.addf %3, %5 : vector<16x256xf32>
    %cst_5 = arith.constant 0.000000e+00 : f32
    %7 = vector.broadcast %cst_5 : f32 to vector<16x256xf32>
    %8 = arith.maximumf %6, %7 : vector<16x256xf32>
    %9 = arith.truncf %8 : vector<16x256xf32> to vector<16x256xbf16>
    %c0_6 = arith.constant 0 : index
    %c0_7 = arith.constant 0 : index
    %10 = vector.load %arg4[%c0_6, %c0_7] : memref<256x128xbf16, #tpu.memory_space<vmem>>, vector<256x128xbf16>
    %cst_8 = arith.constant dense<0.000000e+00> : vector<16x128xf32>
    %11 = tpu.matmul %9, %10, %cst_8 {dimension_numbers = #tpu.dot_dimension_numbers<[1], [0], [0], [1], [0, 0, 1, 1], [], []>} : vector<16x256xbf16>, vector<256x128xbf16>, vector<16x128xf32> -> vector<16x128xf32>
    %c0_9 = arith.constant 0 : index
    %c0_10 = arith.constant 0 : index
    %12 = vector.load %arg5[%c0_9, %c0_10] : memref<1x128xf32, #tpu.memory_space<vmem>>, vector<1x128xf32>
    %13 = vector.broadcast %12 : vector<1x128xf32> to vector<16x128xf32>
    %14 = arith.addf %11, %13 : vector<16x128xf32>
    %cst_11 = arith.constant 0.000000e+00 : f32
    %15 = vector.broadcast %cst_11 : f32 to vector<16x128xf32>
    %16 = arith.maximumf %14, %15 : vector<16x128xf32>
    %17 = arith.truncf %16 : vector<16x128xf32> to vector<16x128xbf16>
    %c0_12 = arith.constant 0 : index
    %c0_13 = arith.constant 0 : index
    %18 = vector.load %arg6[%c0_12, %c0_13] : memref<128x128xbf16, #tpu.memory_space<vmem>>, vector<128x128xbf16>
    %cst_14 = arith.constant dense<0.000000e+00> : vector<16x128xf32>
    %19 = tpu.matmul %17, %18, %cst_14 {dimension_numbers = #tpu.dot_dimension_numbers<[1], [0], [0], [1], [0, 0, 1, 1], [], []>} : vector<16x128xbf16>, vector<128x128xbf16>, vector<16x128xf32> -> vector<16x128xf32>
    %c0_15 = arith.constant 0 : index
    %c0_16 = arith.constant 0 : index
    %20 = vector.load %arg7[%c0_15, %c0_16] : memref<1x128xf32, #tpu.memory_space<vmem>>, vector<1x128xf32>
    %21 = vector.broadcast %20 : vector<1x128xf32> to vector<16x128xf32>
    %22 = arith.addf %19, %21 : vector<16x128xf32>
    %cst_17 = arith.constant dense<0xFF800000> : vector<16xf32>
    %23 = vector.multi_reduction <maximumf>, %22, %cst_17 [1] : vector<16x128xf32> to vector<16xf32>
    %24 = vector.shape_cast %23 : vector<16xf32> to vector<16x1xf32>
    %25 = vector.broadcast %24 : vector<16x1xf32> to vector<16x128xf32>
    %26 = arith.subf %22, %25 : vector<16x128xf32>
    %27 = math.exp %26 : vector<16x128xf32>
    %cst_18 = arith.constant dense<0.000000e+00> : vector<16xf32>
    %28 = vector.multi_reduction <add>, %27, %cst_18 [1] : vector<16x128xf32> to vector<16xf32>
    %29 = vector.shape_cast %28 : vector<16xf32> to vector<16x1xf32>
    %30 = math.log %29 : vector<16x1xf32>
    %31 = arith.addf %30, %24 : vector<16x1xf32>
    %32 = vector.broadcast %31 : vector<16x1xf32> to vector<16x128xf32>
    %33 = arith.subf %22, %32 : vector<16x128xf32>
    %34 = arith.truncf %33 : vector<16x128xf32> to vector<16x128xbf16>
    %c0_19 = arith.constant 0 : index
    %c0_20 = arith.constant 0 : index
    %35 = vector.load %arg8[%c0_19, %c0_20] : memref<16x128xbf16, #tpu.memory_space<vmem>>, vector<16x128xbf16>
    tpu.vector_store %arg8[%c0_19, %c0_20], %34 {strides = array<i32>} : memref<16x128xbf16, #tpu.memory_space<vmem>>, vector<16x128xbf16>,
    return
  }
  func.func @transform_0(%arg0: i32) -> (i32, i32) {
    %c0_i32 = arith.constant 0 : i32
    %c0_i32_0 = arith.constant 0 : i32
    return %arg0, %c0_i32 : i32, i32
  }
  func.func @transform_1(%arg0: i32) -> (i32, i32) {
    %c0_i32 = arith.constant 0 : i32
    %c0_i32_0 = arith.constant 0 : i32
    %c0_i32_1 = arith.constant 0 : i32
    return %c0_i32, %c0_i32_0 : i32, i32
  }
  func.func @transform_2(%arg0: i32) -> (i32, i32) {
    %c0_i32 = arith.constant 0 : i32
    %c0_i32_0 = arith.constant 0 : i32
    %c0_i32_1 = arith.constant 0 : i32
    return %c0_i32, %c0_i32_0 : i32, i32
  }
  func.func @transform_3(%arg0: i32) -> (i32, i32) {
    %c0_i32 = arith.constant 0 : i32
    %c0_i32_0 = arith.constant 0 : i32
    %c0_i32_1 = arith.constant 0 : i32
    return %c0_i32, %c0_i32_0 : i32, i32
  }
  func.func @transform_4(%arg0: i32) -> (i32, i32) {
    %c0_i32 = arith.constant 0 : i32
    %c0_i32_0 = arith.constant 0 : i32
    %c0_i32_1 = arith.constant 0 : i32
    return %c0_i32, %c0_i32_0 : i32, i32
  }
  func.func @transform_5(%arg0: i32) -> (i32, i32) {
    %c0_i32 = arith.constant 0 : i32
    %c0_i32_0 = arith.constant 0 : i32
    %c0_i32_1 = arith.constant 0 : i32
    return %c0_i32, %c0_i32_0 : i32, i32
  }
  func.func @transform_6(%arg0: i32) -> (i32, i32) {
    %c0_i32 = arith.constant 0 : i32
    %c0_i32_0 = arith.constant 0 : i32
    %c0_i32_1 = arith.constant 0 : i32
    return %c0_i32, %c0_i32_0 : i32, i32
  }
  func.func @transform_7(%arg0: i32) -> (i32, i32) {
    %c0_i32 = arith.constant 0 : i32
    %c0_i32_0 = arith.constant 0 : i32
    return %arg0, %c0_i32 : i32, i32
  }
}

</mosaic_0001>

<bundles_post_ra>
// kernel: tpu_custom_call.1
= control target key start
LH: loop header
LB: loop body
LE: loop exit
PB: predicated region body
PF: predicated region fallthrough
CT: control target
= control target key end

     0   :  { %12 = vsyncpa [#allocation3], 0  ;;  %s1473_s0 = inlined_call_operand.hbm [shape: f32[16,512], index: 0, kind: input, shape index: {}]   ;;  %s1474_s1 = inlined_call_operand.hbm [shape: bf16[512,256], index: 1, kind: input, shape index: {}]   ;;  %s1475_s2 = inlined_call_operand.vmem [shape: f32[1,256], index: 2, kind: input, shape index: {}]   ;;  %s1476_s3 = inlined_call_operand.hbm [shape: bf16[256,128], index: 3, kind: input, shape index: {}]   ;;  %s1477_s4 = inlined_call_operand.vmem [shape: f32[1,128], index: 4, kind: input, shape index: {}]   ;;  %s1478_s5 = inlined_call_operand.hbm [shape: bf16[128,128], index: 5, kind: input, shape index: {}]   ;;  %s1479_s6 = inlined_call_operand.vmem [shape: f32[1,128], index: 6, kind: input, shape index: {}]   ;;  %s1480_s7 = inlined_call_operand.hbm [shape: bf16[16,128], index: 7, kind: output, shape index: {}]  }
   0x1   :  { %13 = vsyncpa [#allocation6], 0 }
   0x2   :  { %14 = vsyncpa [#allocation9], 0 }
   0x3   :  { %15 = vsyncpa [#allocation4], 0  ;;  %s1342_s24 = smov [#allocation5]   ;;  %s1224_s28 = scalar_lea.hbm %s1474_s1, 8192 }
   0x4   :  { %s33_s25 = sshll.u32 %s1342_s24, 4  ;;  %p1225_p0 = scmp.ne.s32.totalorder %s1474_s1, %s1224_s28  ;;  %s34_s25 = int_to_ptr.vmem [resolvable:$true] %s33_s25 }
   0x5   :  { %p1228_p1 = scmp.lt.u32.totalorder %s1224_s28, %s1474_s1 }
   0x7   :  { %p1230_p2 = pnand %p1228_p1, %p1225_p0 }
   0x9   :  { %1233 = shalt.err (!%p1230_p2)
}
   0xa   :  { %s1234_s10 = scalar_lea.vmem %s34_s25, 8192  ;;  %p1239_p4 = scmp.lt.s32.totalorder %s34_s25, %s34_s25 }
   0xb   :  { %p1235_p3 = scmp.ne.s32.totalorder %s34_s25, %s1234_s10  ;;  %p1240_p5 = scmp.lt.s32.totalorder %s1234_s10, %s1234_s10 }
   0xd   :  { %p1241_p6 = por %p1240_p5, %p1239_p4 }
   0xf   :  { %p1242_p7 = pnand %p1241_p6, %p1235_p3 }
  0x11   :  { %1245 = shalt.err (!%p1242_p7)
}
  0x12   :  { %s1343_s11 = smov 128   ;;  %s1344_s12 = smov 8  }
  0x13   :  { %39 = dma.hbm_to_vmem [thread:$0]  %s1474_s1, 8192, %s34_s25, [#allocation6], %s1343_s11, %s1343_s11, %s1344_s12  }
  0x14   :  { %s1345_s15 = smov [#allocation2]   ;;  %s1246_s19 = scalar_lea.hbm %s1473_s0, 1024 }
  0x15   :  { %s21_s16 = sshll.u32 %s1345_s15, 4  ;;  %p1247_p8 = scmp.ne.s32.totalorder %s1473_s0, %s1246_s19  ;;  %s22_s16 = int_to_ptr.vmem [resolvable:$true] %s21_s16 }
  0x16   :  { %p1250_p9 = scmp.lt.u32.totalorder %s1246_s19, %s1473_s0 }
  0x18   :  { %p1252_p10 = pnand %p1250_p9, %p1247_p8 }
  0x1a   :  { %1255 = shalt.err (!%p1252_p10)
}
  0x1b   :  { %s1256_s24 = scalar_lea.vmem %s22_s16, 1024  ;;  %p1261_p12 = scmp.lt.s32.totalorder %s22_s16, %s22_s16 }
  0x1c   :  { %p1257_p11 = scmp.ne.s32.totalorder %s22_s16, %s1256_s24  ;;  %p1262_p13 = scmp.lt.s32.totalorder %s1256_s24, %s1256_s24 }
  0x1e   :  { %p1263_p0 = por %p1262_p13, %p1261_p12 }
  0x20   :  { %p1264_p1 = pnand %p1263_p0, %p1257_p11 }
  0x22   :  { %1267 = shalt.err (!%p1264_p1)
}
  0x23   :  { %s1346_s1 = smov 512   ;;  %s1347_s25 = smov 32  }
  0x24   :  { %27 = dma.hbm_to_vmem [thread:$0]  %s1473_s0, 1024, %s22_s16, [#allocation3], %s1346_s1, %s1346_s1, %s1347_s25  }
  0x25   :  { %s1348_s28 = smov [#allocation7]   ;;  %s1268_s9 = scalar_lea.hbm %s1476_s3, 2048 }
  0x26   :  { %s47_s29 = sshll.u32 %s1348_s28, 4  ;;  %p1269_p2 = scmp.ne.s32.totalorder %s1476_s3, %s1268_s9  ;;  %s48_s29 = int_to_ptr.vmem [resolvable:$true] %s47_s29 }
  0x27   :  { %p1272_p3 = scmp.lt.u32.totalorder %s1268_s9, %s1476_s3 }
  0x29   :  { %p1274_p4 = pnand %p1272_p3, %p1269_p2 }
  0x2b   :  { %1277 = shalt.err (!%p1274_p4)
}
  0x2c   :  { %s1278_s14 = scalar_lea.vmem %s48_s29, 2048  ;;  %p1283_p6 = scmp.lt.s32.totalorder %s48_s29, %s48_s29 }
  0x2d   :  { %p1279_p5 = scmp.ne.s32.totalorder %s48_s29, %s1278_s14  ;;  %p1284_p7 = scmp.lt.s32.totalorder %s1278_s14, %s1278_s14 }
  0x2f   :  { %p1285_p8 = por %p1284_p7, %p1283_p6 }
  0x31   :  { %p1286_p9 = pnand %p1285_p8, %p1279_p5 }
  0x33   :  { %1289 = shalt.err (!%p1286_p9)
}
  0x34   :  { %s1349_s0 = smov 64   ;;  %s1350_s15 = smov 4  }
  0x35   :  { %53 = dma.hbm_to_vmem [thread:$0]  %s1476_s3, 2048, %s48_s29, [#allocation6], %s1349_s0, %s1349_s0, %s1350_s15  }
  0x36   :  { %s1351_s18 = smov [#allocation8]   ;;  %s1290_s22 = scalar_lea.hbm %s1478_s5, 1024 }
  0x37   :  { %s61_s19 = sshll.u32 %s1351_s18, 4  ;;  %p1291_p10 = scmp.ne.s32.totalorder %s1478_s5, %s1290_s22  ;;  %s62_s19 = int_to_ptr.vmem [resolvable:$true] %s61_s19 }
  0x38   :  { %p1294_p11 = scmp.lt.u32.totalorder %s1290_s22, %s1478_s5 }
  0x3a   :  { %p1296_p12 = pnand %p1294_p11, %p1291_p10 }
  0x3c   :  { %1299 = shalt.err (!%p1296_p12)
}
  0x3d   :  { %s1300_s26 = scalar_lea.vmem %s62_s19, 1024  ;;  %p1305_p0 = scmp.lt.s32.totalorder %s62_s19, %s62_s19 }
  0x3e   :  { %p1301_p13 = scmp.ne.s32.totalorder %s62_s19, %s1300_s26  ;;  %p1306_p1 = scmp.lt.s32.totalorder %s1300_s26, %s1300_s26 }
  0x40   :  { %p1307_p2 = por %p1306_p1, %p1305_p0 }
  0x42   :  { %p1308_p3 = pnand %p1307_p2, %p1301_p13 }
  0x44   :  { %1311 = shalt.err (!%p1308_p3)
}
  0x45   :  { %67 = dma.hbm_to_vmem [thread:$0]  %s1478_s5, 1024, %s62_s19, [#allocation9], %s1349_s0, %s1349_s0, %s1350_s15  }
  0x46   :  { %1334 = dma.done.wait [#allocation3], 1024  }
  0x47   :  { %1335 = vsyncadd [#allocation3], 4294966272 }
  0x48   :  { %1336 = dma.done.wait [#allocation6], 10240  }
  0x49   :  { %1337 = vsyncadd [#allocation6], 4294957056 }
  0x4a   :  { %1338 = dma.done.wait [#allocation9], 1024  }
  0x4b   :  { %1339 = vsyncadd [#allocation9], 4294966272  ;;  %v1096_v0 = vld [vmem:[#allocation5 + $0x4] ss:$8 sps:$4 sm:$0xff]   ;;  %v1098_v1 = vld [vmem:[#allocation5] ss:$8 sps:$4 sm:$0xff]  }
  0x4c   :  { %491 = vmatprep.subr.bf16.mxu0 %v1096_v0  ;;  %v1099_v2 = vld [vmem:[#allocation5 + $0x14] ss:$8 sps:$4 sm:$0xff]   ;;  %v1101_v3 = vld [vmem:[#allocation5 + $0x10] ss:$8 sps:$4 sm:$0xff]   ;;  %v1102_v4 = vld [vmem:[#allocation5 + $0x24] ss:$8 sps:$4 sm:$0xff]  }
  0x4d   :  { %492 = vmatpush1.bf16.msra.mxu0 %v1098_v1  ;;  %v1104_v5 = vld [vmem:[#allocation5 + $0x20] ss:$8 sps:$4 sm:$0xff]   ;;  %v1105_v6 = vld [vmem:[#allocation5 + $0x34] ss:$8 sps:$4 sm:$0xff]   ;;  %v1107_v7 = vld [vmem:[#allocation5 + $0x30] ss:$8 sps:$4 sm:$0xff]  }
  0x4e   :  { %493 = vmatprep.subr.bf16.mxu0 %v1099_v2  ;;  %v1108_v8 = vld [vmem:[#allocation5 + $0x44] ss:$8 sps:$4 sm:$0xff]   ;;  %v1110_v9 = vld [vmem:[#allocation5 + $0x40] ss:$8 sps:$4 sm:$0xff]   ;;  %v1111_v10 = vld [vmem:[#allocation5 + $0x54] ss:$8 sps:$4 sm:$0xff]  }
  0x4f   :  { %v1113_v11 = vld [vmem:[#allocation5 + $0x50] ss:$8 sps:$4 sm:$0xff]   ;;  %v1114_v12 = vld [vmem:[#allocation5 + $0x64] ss:$8 sps:$4 sm:$0xff]   ;;  %v1116_v16 = vld [vmem:[#allocation5 + $0x60] ss:$8 sps:$4 sm:$0xff]  }
  0x50   :  { %v84_v13 = vld [vmem:[#allocation2 + $0x8] sm:$0xff]  ;;  %v1117_v17 = vld [vmem:[#allocation5 + $0x74] ss:$8 sps:$4 sm:$0xff]   ;;  %v1119_v18 = vld [vmem:[#allocation5 + $0x70] ss:$8 sps:$4 sm:$0xff]   ;;  %vm1353_vm0 = vmmov 0  }
  0x51   :  { %494 = vmatpush1.bf16.msra.mxu0 %v1101_v3  ;;  %v88_v14 = vld [vmem:[#allocation2 + $0x28] sm:$0xff]  ;;  %v1123_v21 = vld [vmem:[#allocation5 + $0x94] ss:$8 sps:$4 sm:$0xff]   ;;  %v1125_v22 = vld [vmem:[#allocation5 + $0x90] ss:$8 sps:$4 sm:$0xff]  }
  0x52   :  { %495 = vmatprep.subr.bf16.mxu0 %v1102_v4  ;;  %v92_v15 = vpack.c.bf16 %v88_v14, %v84_v13  ;;  %v1120_v19 = vld [vmem:[#allocation5 + $0x84] ss:$8 sps:$4 sm:$0xff]   ;;  %v1122_v20 = vld [vmem:[#allocation5 + $0x80] ss:$8 sps:$4 sm:$0xff]   ;;  %v1129_v25 = vld [vmem:[#allocation5 + $0xb4] ss:$8 sps:$4 sm:$0xff]  }
  0x53   :  { %v1126_v23 = vld [vmem:[#allocation5 + $0xa4] ss:$8 sps:$4 sm:$0xff]   ;;  %v1128_v24 = vld [vmem:[#allocation5 + $0xa0] ss:$8 sps:$4 sm:$0xff]   ;;  %v1131_v26 = vld [vmem:[#allocation5 + $0xb0] ss:$8 sps:$4 sm:$0xff]  }
  0x54   :  { %523 = vmatprep.mubr.bf16.mxu0 %v92_v15  ;;  %v1132_v27 = vld [vmem:[#allocation5 + $0xc4] ss:$8 sps:$4 sm:$0xff]   ;;  %v1134_v28 = vld [vmem:[#allocation5 + $0xc0] ss:$8 sps:$4 sm:$0xff]   ;;  %v1135_v29 = vld [vmem:[#allocation5 + $0xd4] ss:$8 sps:$4 sm:$0xff]  }
  0x55   :  { %496 = vmatpush1.bf16.msra.mxu0 %v1104_v5  ;;  %v1192_v30 = vld [vmem:[#allocation7 + $0x40] sm:$0xff]   ;;  %v1194_v32 = vld [vmem:[#allocation7 + $0x48] sm:$0xff]   ;;  %v1196_v34 = vld [vmem:[#allocation7 + $0x50] sm:$0xff]  }
  0x56   :  { %497 = vmatprep.subr.bf16.mxu0 %v1105_v6  ;;  %v1193_v31 = vld [vmem:[#allocation7] sm:$0xff]   ;;  %1024 = vmatprep.subr.bf16.mxu1 %v1192_v30  ;;  %v1195_v33 = vld [vmem:[#allocation7 + $0x8] sm:$0xff]   ;;  %v1137_v35 = vld [vmem:[#allocation5 + $0xd0] ss:$8 sps:$4 sm:$0xff]  }
  0x57   :  { %1025 = vmatpush3.bf16.msra.mxu1 %v1193_v31  ;;  %v1138_v36 = vld [vmem:[#allocation5 + $0xe4] ss:$8 sps:$4 sm:$0xff]   ;;  %v1140_v37 = vld [vmem:[#allocation5 + $0xe0] ss:$8 sps:$4 sm:$0xff]   ;;  %v1197_v38 = vld [vmem:[#allocation7 + $0x10] sm:$0xff]  }
  0x58   :  { %1026 = vmatprep.subr.bf16.mxu1 %v1194_v32  ;;  %v1198_v39 = vld [vmem:[#allocation7 + $0x58] sm:$0xff]   ;;  %v1200_v42 = vld [vmem:[#allocation7 + $0x60] sm:$0xff]   ;;  %v1202_v50 = vld [vmem:[#allocation7 + $0x68] sm:$0xff]  }
  0x59   :  { %498 = vmatpush1.bf16.msra.mxu0 %v1107_v7  ;;  %v1141_v40 = vld [vmem:[#allocation5 + $0xf4] ss:$8 sps:$4 sm:$0xff]   ;;  %v1143_v43 = vld [vmem:[#allocation5 + $0xf0] ss:$8 sps:$4 sm:$0xff]   ;;  %v83_v44 = vld [vmem:[#allocation2] sm:$0xff] }
  0x5a   :  { %499 = vmatprep.subr.bf16.mxu0 %v1108_v8  ;;  %v1199_v41 = vld [vmem:[#allocation7 + $0x18] sm:$0xff]   ;;  %v87_v45 = vld [vmem:[#allocation2 + $0x20] sm:$0xff] }
  0x5b   :  { %1027 = vmatpush3.bf16.msra.mxu1 %v1195_v33  ;;  %v1146_v46 = vld [vmem:[#allocation5 + $0x104] ss:$8 sps:$4 sm:$0xff]   ;;  %v86_v47 = vld [vmem:[#allocation2 + $0x18] sm:$0xff]  ;;  %v1144_v51 = vld [vmem:[#allocation5 + $0x100] ss:$8 sps:$4 sm:$0xff]   ;;  %v91_v52 = vpack.c.bf16 %v87_v45, %v83_v44 }
  0x5c   :  { %1028 = vmatprep.subr.bf16.mxu1 %v1196_v34  ;;  %v90_v48 = vld [vmem:[#allocation2 + $0x38] sm:$0xff]  ;;  %v1201_v49 = vld [vmem:[#allocation7 + $0x20] sm:$0xff]  }
  0x5d   :  { %500 = vmatpush1.bf16.msra.mxu0 %v1110_v9  ;;  %v1149_v53 = vld [vmem:[#allocation5 + $0x114] ss:$8 sps:$4 sm:$0xff]   ;;  %v94_v54 = vpack.c.bf16 %v90_v48, %v86_v47  ;;  %v1147_v55 = vld [vmem:[#allocation5 + $0x110] ss:$8 sps:$4 sm:$0xff]   ;;  %v1152_v56 = vld [vmem:[#allocation5 + $0x124] ss:$8 sps:$4 sm:$0xff]  }
  0x5e   :  { %501 = vmatprep.subr.bf16.mxu0 %v1111_v10  ;;  %v1150_v57 = vld [vmem:[#allocation5 + $0x120] ss:$8 sps:$4 sm:$0xff]   ;;  %v1155_v58 = vld [vmem:[#allocation5 + $0x134] ss:$8 sps:$4 sm:$0xff]   ;;  %v1153_v59 = vld [vmem:[#allocation5 + $0x130] ss:$8 sps:$4 sm:$0xff]  }
  0x5f   :  { %1029 = vmatpush3.bf16.msra.mxu1 %v1197_v38  ;;  %v1158_v60 = vld [vmem:[#allocation5 + $0x144] ss:$8 sps:$4 sm:$0xff]   ;;  %v1156_v61 = vld [vmem:[#allocation5 + $0x140] ss:$8 sps:$4 sm:$0xff]   ;;  %v1161_v62 = vld [vmem:[#allocation5 + $0x154] ss:$8 sps:$4 sm:$0xff]  }
  0x60   :  { %1030 = vmatprep.subr.bf16.mxu1 %v1198_v39  ;;  %v1159_v63 = vld [vmem:[#allocation5 + $0x150] ss:$8 sps:$4 sm:$0xff]   ;;  %v1164_v0 = vld [vmem:[#allocation5 + $0x164] ss:$8 sps:$4 sm:$0xff]   ;;  %v1162_v1 = vld [vmem:[#allocation5 + $0x160] ss:$8 sps:$4 sm:$0xff]  }
  0x61   :  { %502 = vmatpush1.bf16.msra.mxu0 %v1113_v11  ;;  %v1167_v2 = vld [vmem:[#allocation5 + $0x174] ss:$8 sps:$4 sm:$0xff]   ;;  %v1165_v3 = vld [vmem:[#allocation5 + $0x170] ss:$8 sps:$4 sm:$0xff]   ;;  %v1170_v4 = vld [vmem:[#allocation5 + $0x184] ss:$8 sps:$4 sm:$0xff]  }
  0x62   :  { %503 = vmatprep.subr.bf16.mxu0 %v1114_v12  ;;  %v1168_v5 = vld [vmem:[#allocation5 + $0x180] ss:$8 sps:$4 sm:$0xff]   ;;  %v1173_v6 = vld [vmem:[#allocation5 + $0x194] ss:$8 sps:$4 sm:$0xff]   ;;  %v1171_v7 = vld [vmem:[#allocation5 + $0x190] ss:$8 sps:$4 sm:$0xff]  }
  0x63   :  { %1031 = vmatpush3.bf16.msra.mxu1 %v1199_v41  ;;  %v1176_v8 = vld [vmem:[#allocation5 + $0x1a4] ss:$8 sps:$4 sm:$0xff]   ;;  %v1174_v9 = vld [vmem:[#allocation5 + $0x1a0] ss:$8 sps:$4 sm:$0xff]   ;;  %v1179_v10 = vld [vmem:[#allocation5 + $0x1b4] ss:$8 sps:$4 sm:$0xff]  }
  0x64   :  { %1032 = vmatprep.subr.bf16.mxu1 %v1200_v42  ;;  %v1177_v11 = vld [vmem:[#allocation5 + $0x1b0] ss:$8 sps:$4 sm:$0xff]   ;;  %v1182_v12 = vld [vmem:[#allocation5 + $0x1c4] ss:$8 sps:$4 sm:$0xff]   ;;  %v1180_v13 = vld [vmem:[#allocation5 + $0x1c0] ss:$8 sps:$4 sm:$0xff]  }
  0x65   :  { %504 = vmatpush1.bf16.msra.mxu0 %v1116_v16  ;;  %v1185_v14 = vld [vmem:[#allocation5 + $0x1d4] ss:$8 sps:$4 sm:$0xff]   ;;  %v1183_v15 = vld [vmem:[#allocation5 + $0x1d0] ss:$8 sps:$4 sm:$0xff]   ;;  %v1188_v16 = vld [vmem:[#allocation5 + $0x1e4] ss:$8 sps:$4 sm:$0xff]  }
  0x66   :  { %505 = vmatprep.subr.bf16.mxu0 %v1117_v17  ;;  %v1186_v17 = vld [vmem:[#allocation5 + $0x1e0] ss:$8 sps:$4 sm:$0xff]  }
  0x67   :  { %1033 = vmatpush3.bf16.msra.mxu1 %v1201_v49  ;;  %v159_v32 = vld [vmem:[%s1475_s2] sm:$0x3] }
  0x68   :  { %1034 = vmatprep.subr.bf16.mxu1 %v1202_v50  ;;  %v1208_v50 = vld [vmem:[#allocation8] sm:$0xff]  }
  0x69   :  { %506 = vmatpush1.bf16.msra.mxu0 %v1119_v18  ;;  %v1191_v18 = vld [vmem:[#allocation5 + $0x1f4] ss:$8 sps:$4 sm:$0xff]  }
  0x6a   :  { %507 = vmatprep.subr.bf16.mxu0 %v1120_v19  ;;  %v1189_v19 = vld [vmem:[#allocation5 + $0x1f0] ss:$8 sps:$4 sm:$0xff]  }
  0x6d   :  { %508 = vmatpush1.bf16.msra.mxu0 %v1122_v20  ;;  %v85_v20 = vld [vmem:[#allocation2 + $0x10] sm:$0xff] }
  0x6e   :  { %509 = vmatprep.subr.bf16.mxu0 %v1123_v21  ;;  %v89_v21 = vld [vmem:[#allocation2 + $0x30] sm:$0xff] }
  0x71   :  { %510 = vmatpush1.bf16.msra.mxu0 %v1125_v22  ;;  %v93_v22 = vpack.c.bf16 %v89_v21, %v85_v20 }
  0x72   :  { %511 = vmatprep.subr.bf16.mxu0 %v1126_v23  ;;  %v1203_v23 = vld [vmem:[#allocation7 + $0x28] sm:$0xff]  }
  0x73   :  { %1035 = vmatpush3.bf16.msra.mxu1 %v1203_v23 }
  0x75   :  { %512 = vmatpush1.bf16.msra.mxu0 %v1128_v24  ;;  %v1204_v24 = vld [vmem:[#allocation7 + $0x70] sm:$0xff]  }
  0x76   :  { %513 = vmatprep.subr.bf16.mxu0 %v1129_v25  ;;  %v1205_v25 = vld [vmem:[#allocation7 + $0x30] sm:$0xff]   ;;  %1036 = vmatprep.subr.bf16.mxu1 %v1204_v24 }
  0x77   :  { %1037 = vmatpush3.bf16.msra.mxu1 %v1205_v25 }
  0x79   :  { %514 = vmatpush1.bf16.msra.mxu0 %v1131_v26  ;;  %v1206_v26 = vld [vmem:[#allocation7 + $0x78] sm:$0xff]  }
  0x7a   :  { %515 = vmatprep.subr.bf16.mxu0 %v1132_v27  ;;  %v1207_v27 = vld [vmem:[#allocation7 + $0x38] sm:$0xff]   ;;  %1038 = vmatprep.subr.bf16.mxu1 %v1206_v26 }
  0x7b   :  { %1039 = vmatpush3.bf16.msra.mxu1 %v1207_v27 }
  0x7d   :  { %516 = vmatpush1.bf16.msra.mxu0 %v1134_v28  ;;  %v1352_v28 = vmov 0.0  }
  0x7e   :  { %517 = vmatprep.subr.bf16.mxu0 %v1135_v29  ;;  %1055 = vmatprep.subr.bf16.mxu1 %v1352_v28  ;;  %v161_v29 = vlaneseq }
  0x80   :  { %v162_v30 = vshrl.u32 %v161_v29, 7 }
  0x81   :  { %518 = vmatpush1.bf16.msra.mxu0 %v1137_v35 }
  0x82   :  { %519 = vmatprep.subr.bf16.mxu0 %v1138_v36  ;;  %v163_v31 = vsub.s32 0, %v162_v30  ;;  %v167_v33 = vsub.s32 1, %v162_v30 }
  0x84   :  { %v164_v34 = vrot.slane %v159_v32, %v163_v31  ;;  %v168_v35 = vrot.slane %v159_v32, %v167_v33 }
  0x85   :  { %520 = vmatpush1.bf16.msra.mxu0 %v1140_v37 }
  0x86   :  { %521 = vmatprep.subr.bf16.mxu0 %v1141_v40 }
  0x89   :  { %522 = vmatpush1.bf16.msra.mxu0 %v1143_v43 }
  0x8a   :  { %534 = vmatprep.subr.bf16.mxu0 %v1146_v46 }
  0x8c   :  { %524 = vmatmul.mubr.bf16.vlgmr.msra.gmra.mrb[0].mxu0 %v91_v52  ;;  %v1210_v52 = vld [vmem:[#allocation8 + $0x10] sm:$0xff]  }
  0x8d   :  { %535 = vmatpush1.bf16.msra.mxu0 %v1144_v51  ;;  %566 = vmatprep.mubr.bf16.mxu0 %v94_v54  ;;  %v1209_v51 = vld [vmem:[#allocation8 + $0x8] sm:$0xff]   ;;  %v1212_v54 = vld [vmem:[#allocation8 + $0x20] sm:$0xff]  }
  0x8e   :  { %536 = vmatprep.subr.bf16.mxu0 %v1149_v53  ;;  %v1211_v53 = vld [vmem:[#allocation8 + $0x18] sm:$0xff]  }
  0x91   :  { %537 = vmatpush1.bf16.msra.mxu0 %v1147_v55  ;;  %v1213_v55 = vld [vmem:[#allocation8 + $0x28] sm:$0xff]  }
  0x92   :  { %538 = vmatprep.subr.bf16.mxu0 %v1152_v56  ;;  %v1214_v56 = vld [vmem:[#allocation8 + $0x30] sm:$0xff]  }
  0x95   :  { %539 = vmatpush1.bf16.msra.mxu0 %v1150_v57  ;;  %v1215_v57 = vld [vmem:[#allocation8 + $0x38] sm:$0xff]  }
  0x96   :  { %540 = vmatprep.subr.bf16.mxu0 %v1155_v58 }
  0x99   :  { %541 = vmatpush1.bf16.msra.mxu0 %v1153_v59  ;;  %v989_v59 = vld [vmem:[%s1477_s4] ss:$0 sm:$0xff]  ;;  %s1354_s4 = smov [#allocation10]  }
  0x9a   :  { %542 = vmatprep.subr.bf16.mxu0 %v1158_v60 }
  0x9d   :  { %543 = vmatpush1.bf16.msra.mxu0 %v1156_v61 }
  0x9e   :  { %544 = vmatprep.subr.bf16.mxu0 %v1161_v62 }
  0xa1   :  { %545 = vmatpush1.bf16.msra.mxu0 %v1159_v63 }
  0xa2   :  { %546 = vmatprep.subr.bf16.mxu0 %v1164_v0 }
  0xa5   :  { %547 = vmatpush1.bf16.msra.mxu0 %v1162_v1 }
  0xa6   :  { %548 = vmatprep.subr.bf16.mxu0 %v1167_v2 }
  0xa9   :  { %549 = vmatpush1.bf16.msra.mxu0 %v1165_v3 }
  0xaa   :  { %550 = vmatprep.subr.bf16.mxu0 %v1170_v4 }
  0xad   :  { %551 = vmatpush1.bf16.msra.mxu0 %v1168_v5 }
  0xae   :  { %552 = vmatprep.subr.bf16.mxu0 %v1173_v6  ;;  %v1006_v6 = vld [vmem:[%s1479_s6] ss:$0 sm:$0xff]  ;;  %s911_s6 = sshll.u32 %s1354_s4, 4  ;;  %s912_s6 = int_to_ptr.vmem [resolvable:$true] %s911_s6 }
  0xaf   :  { %s1312_s9 = scalar_lea.vmem %s912_s6, 128  ;;  %p1317_p5 = scmp.lt.s32.totalorder %s912_s6, %s912_s6 }
  0xb0   :  { %p1313_p4 = scmp.ne.s32.totalorder %s912_s6, %s1312_s9  ;;  %p1318_p6 = scmp.lt.s32.totalorder %s1312_s9, %s1312_s9 }
  0xb1   :  { %553 = vmatpush1.bf16.msra.mxu0 %v1171_v7 }
  0xb2   :  { %554 = vmatprep.subr.bf16.mxu0 %v1176_v8  ;;  %p1319_p7 = por %p1318_p6, %p1317_p5 }
  0xb4   :  { %p1320_p8 = pnand %p1319_p7, %p1313_p4 }
  0xb5   :  { %555 = vmatpush1.bf16.msra.mxu0 %v1174_v9 }
  0xb6   :  { %556 = vmatprep.subr.bf16.mxu0 %v1179_v10 }
  0xb9   :  { %557 = vmatpush1.bf16.msra.mxu0 %v1177_v11 }
  0xba   :  { %558 = vmatprep.subr.bf16.mxu0 %v1182_v12 }
  0xbd   :  { %559 = vmatpush1.bf16.msra.mxu0 %v1180_v13 }
  0xbe   :  { %560 = vmatprep.subr.bf16.mxu0 %v1185_v14 }
  0xc1   :  { %561 = vmatpush1.bf16.msra.mxu0 %v1183_v15 }
  0xc2   :  { %562 = vmatprep.subr.bf16.mxu0 %v1188_v16 }
  0xc5   :  { %563 = vmatpush1.bf16.msra.mxu0 %v1186_v17 }
  0xc6   :  { %564 = vmatprep.subr.bf16.mxu0 %v1191_v18 }
  0xc9   :  { %565 = vmatpush1.bf16.msra.mxu0 %v1189_v19 }
  0xcc   :  { %567 = vmatmul.mubr.bf16.vlgmr.msra.gmra.mrb[0].mxu0 %v93_v22 }
 0x19f   :  { %v568_v36 = vpop.f32.mrb[0].mxu0 }
 0x1a0   :  { %v1075_v37 = vadd.f32 %v568_v36, %v164_v34  ;;  %v570_v38 = vpop.f32.mrb[1].mxu0 }
 0x1a1   :  { %v1076_v39 = vadd.f32 %v570_v38, %v168_v35  ;;  %v572_v40 = vpop.f32.mrb[2].mxu0 }
 0x1a2   :  { %v1077_v41 = vadd.f32 %v572_v40, %v164_v34  ;;  %v574_v42 = vpop.f32.mrb[3].mxu0  ;;  %v577_v44 = vmax.f32 %v1075_v37, 0.0 }
 0x1a3   :  { %v1078_v43 = vadd.f32 %v574_v42, %v168_v35  ;;  %v578_v46 = vmax.f32 %v1076_v39, 0.0 }
 0x1a4   :  { %v579_v45 = vmax.f32 %v1077_v41, 0.0 }
 0x1a5   :  { %v580_v47 = vmax.f32 %v1078_v43, 0.0 }
 0x1a6   :  { %v581_v48 = vpack.c.bf16 %v579_v45, %v577_v44 }
 0x1a7   :  { %v582_v49 = vpack.c.bf16 %v580_v47, %v578_v46 }
 0x1a9   :  { %750 = vmatprep.mubr.bf16.mxu1 %v582_v49 }
 0x1aa   :  { %751 = vmatmul.mubr.bf16.vlgmr.msra.gmra.mrb[0].mxu1 %v581_v48 }
 0x1ab   :  { %1056 = vmatpush3.bf16.msra.mxu1 %v1208_v50  ;;  %1071 = vmatprep.mubr.msk.bf16.mxu1 %vm1353_vm0, %v1352_v28 }
 0x1ac   :  { %1057 = vmatprep.subr.bf16.mxu1 %v1352_v28 }
 0x1af   :  { %1058 = vmatpush3.bf16.msra.mxu1 %v1209_v51 }
 0x1b0   :  { %1059 = vmatprep.subr.bf16.mxu1 %v1352_v28 }
 0x1b3   :  { %1060 = vmatpush3.bf16.msra.mxu1 %v1210_v52 }
 0x1b4   :  { %1061 = vmatprep.subr.bf16.mxu1 %v1352_v28 }
 0x1b7   :  { %1062 = vmatpush3.bf16.msra.mxu1 %v1211_v53 }
 0x1b8   :  { %1063 = vmatprep.subr.bf16.mxu1 %v1352_v28 }
 0x1bb   :  { %1064 = vmatpush3.bf16.msra.mxu1 %v1212_v54 }
 0x1bc   :  { %1065 = vmatprep.subr.bf16.mxu1 %v1352_v28 }
 0x1bf   :  { %1066 = vmatpush3.bf16.msra.mxu1 %v1213_v55 }
 0x1c0   :  { %1067 = vmatprep.subr.bf16.mxu1 %v1352_v28 }
 0x1c3   :  { %1068 = vmatpush3.bf16.msra.mxu1 %v1214_v56 }
 0x1c4   :  { %1069 = vmatprep.subr.bf16.mxu1 %v1352_v28 }
 0x1c7   :  { %1070 = vmatpush3.bf16.msra.mxu1 %v1215_v57 }
 0x27d   :  { %v1040_v58 = vpop.f32.mrb[0].mxu1 }
 0x27e   :  { %v1041_v60 = vpop.f32.mrb[1].mxu1 }
 0x27f   :  { %v1042_v61 = vadd.f32 %v1041_v60, %v1040_v58  ;;  %v1043_v62 = vpop.f32.mrb[2].mxu1 }
 0x280   :  { %v1044_v63 = vpop.f32.mrb[3].mxu1 }
 0x281   :  { %v753_v0 = vadd.f32 %v1042_v61, %v989_v59  ;;  %v1045_v1 = vadd.f32 %v1044_v63, %v1043_v62 }
 0x283   :  { %v756_v2 = vadd.f32 %v1045_v1, %v989_v59  ;;  %v759_v3 = vmax.f32 %v753_v0, 0.0 }
 0x285   :  { %v760_v4 = vmax.f32 %v756_v2, 0.0 }
 0x287   :  { %v761_v5 = vpack.c.bf16 %v760_v4, %v759_v3 }
 0x289   :  { %1072 = vmatmul.mubr.bf16.vlgmr.msra.gmra.mrb[4].mxu1 %v761_v5 }
 0x35c   :  { %v867_v7 = vpop.f32.mrb[4].mxu1 }
 0x35d   :  { %v868_v8 = vadd.f32 %v1006_v6, %v867_v7  ;;  %v1073_v9 = vpop.f32.mrb[5].mxu1 }
 0x35e   :  { %v870_v10 = vpop.f32.mrb[6].mxu1 }
 0x35f   :  { %874 = vmax.xlane.f32.xlu0 %v868_v8  ;;  %v1074_v11 = vpop.f32.mrb[7].mxu1  ;;  %v871_v12 = vadd.f32 %v1006_v6, %v870_v10 }
 0x363   :  { %876 = vmax.xlane.f32.xlu0 %v871_v12 }
 0x3ec   :  { %v875_v13 = vpop.xlane.xlu0 %874 }
 0x3ed   :  { %v878_v14 = vsub.f32 %v868_v8, %v875_v13 }
 0x3ef   :  { %v880_v15 = vmul.f32 1.442695, %v878_v14 }
 0x3f0   :  { %v877_v16 = vpop.xlane.xlu0 %876 }
 0x3f1   :  { %v879_v17 = vsub.f32 %v871_v12, %v877_v16  ;;  %1216 = vpow2.f32 %v880_v15 }
 0x3f3   :  { %v882_v18 = vmul.f32 1.442695, %v879_v17 }
 0x3f5   :  { %1218 = vpow2.f32 %v882_v18 }
 0x3fb   :  { %v1217_v19 = vpop.eup %1216 }
 0x3fc   :  { %884 = vadd.xlane.f32.xlu1 %v1217_v19 }
 0x3ff   :  { %v1219_v20 = vpop.eup %1218 }
 0x400   :  { %886 = vadd.xlane.f32.xlu1 %v1219_v20 }
 0x489   :  { %v885_v21 = vpop.xlane.xlu1 %884 }
 0x48a   :  { %1220 = vlog2.f32 %v885_v21 }
 0x48d   :  { %v887_v22 = vpop.xlane.xlu1 %886 }
 0x48e   :  { %1222 = vlog2.f32 %v887_v22 }
 0x494   :  { %v1221_v23 = vpop.eup %1220 }
 0x495   :  { %v889_v24 = vmul.f32 0.6931472, %v1221_v23 }
 0x497   :  { %v892_v26 = vadd.f32 %v889_v24, %v875_v13 }
 0x498   :  { %v1223_v25 = vpop.eup %1222 }
 0x499   :  { %v891_v27 = vmul.f32 0.6931472, %v1223_v25  ;;  %v894_v29 = vsub.f32 %v868_v8, %v892_v26 }
 0x49b   :  { %v893_v28 = vadd.f32 %v891_v27, %v877_v16 }
 0x49d   :  { %v895_v30 = vsub.f32 %v871_v12, %v893_v28 }
 0x49f   :  { %v1022_v31 = vpack.c.bf16 %v895_v30, %v894_v29 }
 0x4a1   :  { %1023 = vst [vmem:[#allocation10] sm:$0xff] %v1022_v31  }
 0x4a2   :  { %1323 = shalt.err (!%p1320_p8)
}
 0x4a3   :  { %s1324_s12 = scalar_lea.hbm %s1480_s7, 128 }
 0x4a4   :  { %p1325_p9 = scmp.ne.s32.totalorder %s1480_s7, %s1324_s12  ;;  %p1328_p10 = scmp.lt.u32.totalorder %s1324_s12, %s1480_s7 }
 0x4a6   :  { %p1330_p11 = pnand %p1328_p10, %p1325_p9 }
 0x4a8   :  { %1333 = shalt.err (!%p1330_p11)
}
 0x4a9   :  { %917 = dma.vmem_to_hbm [thread:$0]  %s912_s6, 128, %s1480_s7, [#allocation4], %s1349_s0, %s1349_s0, %s1350_s15  }
 0x4aa   :  { %1340 = dma.done.wait [#allocation4], 128  }
 0x4ab   :  { %1341 = vsyncadd [#allocation4], 4294967168 }
 0x4ac   :  { %921 = vsyncpa [#allocation3], 1 }
 0x4ad   :  { %922 = vsyncpa [#allocation6], 1 }
 0x4ae   :  { %923 = vsyncpa [#allocation9], 1 }
 0x4af   :  { %924 = vsyncpa [#allocation4], 1 }

// kernel: tpu_custom_call.1
= control target key start
LH: loop header
LB: loop body
LE: loop exit
PB: predicated region body
PF: predicated region fallthrough
CT: control target
= control target key end

     0   :  { %12 = vsyncpa [#allocation3], 0  ;;  %s1473_s0 = inlined_call_operand.hbm [shape: f32[16,512], index: 0, kind: input, shape index: {}]   ;;  %s1474_s1 = inlined_call_operand.hbm [shape: bf16[512,256], index: 1, kind: input, shape index: {}]   ;;  %s1475_s2 = inlined_call_operand.vmem [shape: f32[1,256], index: 2, kind: input, shape index: {}]   ;;  %s1476_s3 = inlined_call_operand.hbm [shape: bf16[256,128], index: 3, kind: input, shape index: {}]   ;;  %s1477_s4 = inlined_call_operand.vmem [shape: f32[1,128], index: 4, kind: input, shape index: {}]   ;;  %s1478_s5 = inlined_call_operand.hbm [shape: bf16[128,128], index: 5, kind: input, shape index: {}]   ;;  %s1479_s6 = inlined_call_operand.vmem [shape: f32[1,128], index: 6, kind: input, shape index: {}]   ;;  %s1480_s7 = inlined_call_operand.hbm [shape: bf16[16,128], index: 7, kind: output, shape index: {}]  }
   0x1   :  { %13 = vsyncpa [#allocation6], 0 }
   0x2   :  { %14 = vsyncpa [#allocation9], 0 }
   0x3   :  { %15 = vsyncpa [#allocation4], 0  ;;  %s1342_s24 = smov [#allocation5]   ;;  %s1224_s28 = scalar_lea.hbm %s1474_s1, 8192 }
   0x4   :  { %s33_s25 = sshll.u32 %s1342_s24, 4  ;;  %p1225_p0 = scmp.ne.s32.totalorder %s1474_s1, %s1224_s28  ;;  %s34_s25 = int_to_ptr.vmem [resolvable:$true] %s33_s25 }
   0x5   :  { %p1228_p1 = scmp.lt.u32.totalorder %s1224_s28, %s1474_s1 }
   0x7   :  { %p1230_p2 = pnand %p1228_p1, %p1225_p0 }
   0x9   :  { %1233 = shalt.err (!%p1230_p2)
}
   0xa   :  { %s1234_s10 = scalar_lea.vmem %s34_s25, 8192  ;;  %p1239_p4 = scmp.lt.s32.totalorder %s34_s25, %s34_s25 }
   0xb   :  { %p1235_p3 = scmp.ne.s32.totalorder %s34_s25, %s1234_s10  ;;  %p1240_p5 = scmp.lt.s32.totalorder %s1234_s10, %s1234_s10 }
   0xd   :  { %p1241_p6 = por %p1240_p5, %p1239_p4 }
   0xf   :  { %p1242_p7 = pnand %p1241_p6, %p1235_p3 }
  0x11   :  { %1245 = shalt.err (!%p1242_p7)
}
  0x12   :  { %s1343_s11 = smov 128   ;;  %s1344_s12 = smov 8  }
  0x13   :  { %39 = dma.hbm_to_vmem [thread:$0]  %s1474_s1, 8192, %s34_s25, [#allocation6], %s1343_s11, %s1343_s11, %s1344_s12  }
  0x14   :  { %s1345_s15 = smov [#allocation2]   ;;  %s1246_s19 = scalar_lea.hbm %s1473_s0, 1024 }
  0x15   :  { %s21_s16 = sshll.u32 %s1345_s15, 4  ;;  %p1247_p8 = scmp.ne.s32.totalorder %s1473_s0, %s1246_s19  ;;  %s22_s16 = int_to_ptr.vmem [resolvable:$true] %s21_s16 }
  0x16   :  { %p1250_p9 = scmp.lt.u32.totalorder %s1246_s19, %s1473_s0 }
  0x18   :  { %p1252_p10 = pnand %p1250_p9, %p1247_p8 }
  0x1a   :  { %1255 = shalt.err (!%p1252_p10)
}
  0x1b   :  { %s1256_s24 = scalar_lea.vmem %s22_s16, 1024  ;;  %p1261_p12 = scmp.lt.s32.totalorder %s22_s16, %s22_s16 }
  0x1c   :  { %p1257_p11 = scmp.ne.s32.totalorder %s22_s16, %s1256_s24  ;;  %p1262_p13 = scmp.lt.s32.totalorder %s1256_s24, %s1256_s24 }
  0x1e   :  { %p1263_p0 = por %p1262_p13, %p1261_p12 }
  0x20   :  { %p1264_p1 = pnand %p1263_p0, %p1257_p11 }
  0x22   :  { %1267 = shalt.err (!%p1264_p1)
}
  0x23   :  { %s1346_s1 = smov 512   ;;  %s1347_s25 = smov 32  }
  0x24   :  { %27 = dma.hbm_to_vmem [thread:$0]  %s1473_s0, 1024, %s22_s16, [#allocation3], %s1346_s1, %s1346_s1, %s1347_s25  }
  0x25   :  { %s1348_s28 = smov [#allocation7]   ;;  %s1268_s9 = scalar_lea.hbm %s1476_s3, 2048 }
  0x26   :  { %s47_s29 = sshll.u32 %s1348_s28, 4  ;;  %p1269_p2 = scmp.ne.s32.totalorder %s1476_s3, %s1268_s9  ;;  %s48_s29 = int_to_ptr.vmem [resolvable:$true] %s47_s29 }
  0x27   :  { %p1272_p3 = scmp.lt.u32.totalorder %s1268_s9, %s1476_s3 }
  0x29   :  { %p1274_p4 = pnand %p1272_p3, %p1269_p2 }
  0x2b   :  { %1277 = shalt.err (!%p1274_p4)
}
  0x2c   :  { %s1278_s14 = scalar_lea.vmem %s48_s29, 2048  ;;  %p1283_p6 = scmp.lt.s32.totalorder %s48_s29, %s48_s29 }
  0x2d   :  { %p1279_p5 = scmp.ne.s32.totalorder %s48_s29, %s1278_s14  ;;  %p1284_p7 = scmp.lt.s32.totalorder %s1278_s14, %s1278_s14 }
  0x2f   :  { %p1285_p8 = por %p1284_p7, %p1283_p6 }
  0x31   :  { %p1286_p9 = pnand %p1285_p8, %p1279_p5 }
  0x33   :  { %1289 = shalt.err (!%p1286_p9)
}
  0x34   :  { %s1349_s0 = smov 64   ;;  %s1350_s15 = smov 4  }
  0x35   :  { %53 = dma.hbm_to_vmem [thread:$0]  %s1476_s3, 2048, %s48_s29, [#allocation6], %s1349_s0, %s1349_s0, %s1350_s15  }
  0x36   :  { %s1351_s18 = smov [#allocation8]   ;;  %s1290_s22 = scalar_lea.hbm %s1478_s5, 1024 }
  0x37   :  { %s61_s19 = sshll.u32 %s1351_s18, 4  ;;  %p1291_p10 = scmp.ne.s32.totalorder %s1478_s5, %s1290_s22  ;;  %s62_s19 = int_to_ptr.vmem [resolvable:$true] %s61_s19 }
  0x38   :  { %p1294_p11 = scmp.lt.u32.totalorder %s1290_s22, %s1478_s5 }
  0x3a   :  { %p1296_p12 = pnand %p1294_p11, %p1291_p10 }
  0x3c   :  { %1299 = shalt.err (!%p1296_p12)
}
  0x3d   :  { %s1300_s26 = scalar_lea.vmem %s62_s19, 1024  ;;  %p1305_p0 = scmp.lt.s32.totalorder %s62_s19, %s62_s19 }
  0x3e   :  { %p1301_p13 = scmp.ne.s32.totalorder %s62_s19, %s1300_s26  ;;  %p1306_p1 = scmp.lt.s32.totalorder %s1300_s26, %s1300_s26 }
  0x40   :  { %p1307_p2 = por %p1306_p1, %p1305_p0 }
  0x42   :  { %p1308_p3 = pnand %p1307_p2, %p1301_p13 }
  0x44   :  { %1311 = shalt.err (!%p1308_p3)
}
  0x45   :  { %67 = dma.hbm_to_vmem [thread:$0]  %s1478_s5, 1024, %s62_s19, [#allocation9], %s1349_s0, %s1349_s0, %s1350_s15  }
  0x46   :  { %1334 = dma.done.wait [#allocation3], 1024  }
  0x47   :  { %1335 = vsyncadd [#allocation3], 4294966272 }
  0x48   :  { %1336 = dma.done.wait [#allocation6], 10240  }
  0x49   :  { %1337 = vsyncadd [#allocation6], 4294957056 }
  0x4a   :  { %1338 = dma.done.wait [#allocation9], 1024  }
  0x4b   :  { %1339 = vsyncadd [#allocation9], 4294966272  ;;  %v1096_v0 = vld [vmem:[#allocation5 + $0x4] ss:$8 sps:$4 sm:$0xff]   ;;  %v1098_v1 = vld [vmem:[#allocation5] ss:$8 sps:$4 sm:$0xff]  }
  0x4c   :  { %491 = vmatprep.subr.bf16.mxu0 %v1096_v0  ;;  %v1099_v2 = vld [vmem:[#allocation5 + $0x14] ss:$8 sps:$4 sm:$0xff]   ;;  %v1101_v3 = vld [vmem:[#allocation5 + $0x10] ss:$8 sps:$4 sm:$0xff]   ;;  %v1102_v4 = vld [vmem:[#allocation5 + $0x24] ss:$8 sps:$4 sm:$0xff]  }
  0x4d   :  { %492 = vmatpush1.bf16.msra.mxu0 %v1098_v1  ;;  %v1104_v5 = vld [vmem:[#allocation5 + $0x20] ss:$8 sps:$4 sm:$0xff]   ;;  %v1105_v6 = vld [vmem:[#allocation5 + $0x34] ss:$8 sps:$4 sm:$0xff]   ;;  %v1107_v7 = vld [vmem:[#allocation5 + $0x30] ss:$8 sps:$4 sm:$0xff]  }
  0x4e   :  { %493 = vmatprep.subr.bf16.mxu0 %v1099_v2  ;;  %v1108_v8 = vld [vmem:[#allocation5 + $0x44] ss:$8 sps:$4 sm:$0xff]   ;;  %v1110_v9 = vld [vmem:[#allocation5 + $0x40] ss:$8 sps:$4 sm:$0xff]   ;;  %v1111_v10 = vld [vmem:[#allocation5 + $0x54] ss:$8 sps:$4 sm:$0xff]  }
  0x4f   :  { %v1113_v11 = vld [vmem:[#allocation5 + $0x50] ss:$8 sps:$4 sm:$0xff]   ;;  %v1114_v12 = vld [vmem:[#allocation5 + $0x64] ss:$8 sps:$4 sm:$0xff]   ;;  %v1116_v16 = vld [vmem:[#allocation5 + $0x60] ss:$8 sps:$4 sm:$0xff]  }
  0x50   :  { %v84_v13 = vld [vmem:[#allocation2 + $0x8] sm:$0xff]  ;;  %v1117_v17 = vld [vmem:[#allocation5 + $0x74] ss:$8 sps:$4 sm:$0xff]   ;;  %v1119_v18 = vld [vmem:[#allocation5 + $0x70] ss:$8 sps:$4 sm:$0xff]   ;;  %vm1353_vm0 = vmmov 0  }
  0x51   :  { %494 = vmatpush1.bf16.msra.mxu0 %v1101_v3  ;;  %v88_v14 = vld [vmem:[#allocation2 + $0x28] sm:$0xff]  ;;  %v1123_v21 = vld [vmem:[#allocation5 + $0x94] ss:$8 sps:$4 sm:$0xff]   ;;  %v1125_v22 = vld [vmem:[#allocation5 + $0x90] ss:$8 sps:$4 sm:$0xff]  }
  0x52   :  { %495 = vmatprep.subr.bf16.mxu0 %v1102_v4  ;;  %v92_v15 = vpack.c.bf16 %v88_v14, %v84_v13  ;;  %v1120_v19 = vld [vmem:[#allocation5 + $0x84] ss:$8 sps:$4 sm:$0xff]   ;;  %v1122_v20 = vld [vmem:[#allocation5 + $0x80] ss:$8 sps:$4 sm:$0xff]   ;;  %v1129_v25 = vld [vmem:[#allocation5 + $0xb4] ss:$8 sps:$4 sm:$0xff]  }
  0x53   :  { %v1126_v23 = vld [vmem:[#allocation5 + $0xa4] ss:$8 sps:$4 sm:$0xff]   ;;  %v1128_v24 = vld [vmem:[#allocation5 + $0xa0] ss:$8 sps:$4 sm:$0xff]   ;;  %v1131_v26 = vld [vmem:[#allocation5 + $0xb0] ss:$8 sps:$4 sm:$0xff]  }
  0x54   :  { %523 = vmatprep.mubr.bf16.mxu0 %v92_v15  ;;  %v1132_v27 = vld [vmem:[#allocation5 + $0xc4] ss:$8 sps:$4 sm:$0xff]   ;;  %v1134_v28 = vld [vmem:[#allocation5 + $0xc0] ss:$8 sps:$4 sm:$0xff]   ;;  %v1135_v29 = vld [vmem:[#allocation5 + $0xd4] ss:$8 sps:$4 sm:$0xff]  }
  0x55   :  { %496 = vmatpush1.bf16.msra.mxu0 %v1104_v5  ;;  %v1192_v30 = vld [vmem:[#allocation7 + $0x40] sm:$0xff]   ;;  %v1194_v32 = vld [vmem:[#allocation7 + $0x48] sm:$0xff]   ;;  %v1196_v34 = vld [vmem:[#allocation7 + $0x50] sm:$0xff]  }
  0x56   :  { %497 = vmatprep.subr.bf16.mxu0 %v1105_v6  ;;  %v1193_v31 = vld [vmem:[#allocation7] sm:$0xff]   ;;  %1024 = vmatprep.subr.bf16.mxu1 %v1192_v30  ;;  %v1195_v33 = vld [vmem:[#allocation7 + $0x8] sm:$0xff]   ;;  %v1137_v35 = vld [vmem:[#allocation5 + $0xd0] ss:$8 sps:$4 sm:$0xff]  }
  0x57   :  { %1025 = vmatpush3.bf16.msra.mxu1 %v1193_v31  ;;  %v1138_v36 = vld [vmem:[#allocation5 + $0xe4] ss:$8 sps:$4 sm:$0xff]   ;;  %v1140_v37 = vld [vmem:[#allocation5 + $0xe0] ss:$8 sps:$4 sm:$0xff]   ;;  %v1197_v38 = vld [vmem:[#allocation7 + $0x10] sm:$0xff]  }
  0x58   :  { %1026 = vmatprep.subr.bf16.mxu1 %v1194_v32  ;;  %v1198_v39 = vld [vmem:[#allocation7 + $0x58] sm:$0xff]   ;;  %v1200_v42 = vld [vmem:[#allocation7 + $0x60] sm:$0xff]   ;;  %v1202_v50 = vld [vmem:[#allocation7 + $0x68] sm:$0xff]  }
  0x59   :  { %498 = vmatpush1.bf16.msra.mxu0 %v1107_v7  ;;  %v1141_v40 = vld [vmem:[#allocation5 + $0xf4] ss:$8 sps:$4 sm:$0xff]   ;;  %v1143_v43 = vld [vmem:[#allocation5 + $0xf0] ss:$8 sps:$4 sm:$0xff]   ;;  %v83_v44 = vld [vmem:[#allocation2] sm:$0xff] }
  0x5a   :  { %499 = vmatprep.subr.bf16.mxu0 %v1108_v8  ;;  %v1199_v41 = vld [vmem:[#allocation7 + $0x18] sm:$0xff]   ;;  %v87_v45 = vld [vmem:[#allocation2 + $0x20] sm:$0xff] }
  0x5b   :  { %1027 = vmatpush3.bf16.msra.mxu1 %v1195_v33  ;;  %v1146_v46 = vld [vmem:[#allocation5 + $0x104] ss:$8 sps:$4 sm:$0xff]   ;;  %v86_v47 = vld [vmem:[#allocation2 + $0x18] sm:$0xff]  ;;  %v1144_v51 = vld [vmem:[#allocation5 + $0x100] ss:$8 sps:$4 sm:$0xff]   ;;  %v91_v52 = vpack.c.bf16 %v87_v45, %v83_v44 }
  0x5c   :  { %1028 = vmatprep.subr.bf16.mxu1 %v1196_v34  ;;  %v90_v48 = vld [vmem:[#allocation2 + $0x38] sm:$0xff]  ;;  %v1201_v49 = vld [vmem:[#allocation7 + $0x20] sm:$0xff]  }
  0x5d   :  { %500 = vmatpush1.bf16.msra.mxu0 %v1110_v9  ;;  %v1149_v53 = vld [vmem:[#allocation5 + $0x114] ss:$8 sps:$4 sm:$0xff]   ;;  %v94_v54 = vpack.c.bf16 %v90_v48, %v86_v47  ;;  %v1147_v55 = vld [vmem:[#allocation5 + $0x110] ss:$8 sps:$4 sm:$0xff]   ;;  %v1152_v56 = vld [vmem:[#allocation5 + $0x124] ss:$8 sps:$4 sm:$0xff]  }
  0x5e   :  { %501 = vmatprep.subr.bf16.mxu0 %v1111_v10  ;;  %v1150_v57 = vld [vmem:[#allocation5 + $0x120] ss:$8 sps:$4 sm:$0xff]   ;;  %v1155_v58 = vld [vmem:[#allocation5 + $0x134] ss:$8 sps:$4 sm:$0xff]   ;;  %v1153_v59 = vld [vmem:[#allocation5 + $0x130] ss:$8 sps:$4 sm:$0xff]  }
  0x5f   :  { %1029 = vmatpush3.bf16.msra.mxu1 %v1197_v38  ;;  %v1158_v60 = vld [vmem:[#allocation5 + $0x144] ss:$8 sps:$4 sm:$0xff]   ;;  %v1156_v61 = vld [vmem:[#allocation5 + $0x140] ss:$8 sps:$4 sm:$0xff]   ;;  %v1161_v62 = vld [vmem:[#allocation5 + $0x154] ss:$8 sps:$4 sm:$0xff]  }
  0x60   :  { %1030 = vmatprep.subr.bf16.mxu1 %v1198_v39  ;;  %v1159_v63 = vld [vmem:[#allocation5 + $0x150] ss:$8 sps:$4 sm:$0xff]   ;;  %v1164_v0 = vld [vmem:[#allocation5 + $0x164] ss:$8 sps:$4 sm:$0xff]   ;;  %v1162_v1 = vld [vmem:[#allocation5 + $0x160] ss:$8 sps:$4 sm:$0xff]  }
  0x61   :  { %502 = vmatpush1.bf16.msra.mxu0 %v1113_v11  ;;  %v1167_v2 = vld [vmem:[#allocation5 + $0x174] ss:$8 sps:$4 sm:$0xff]   ;;  %v1165_v3 = vld [vmem:[#allocation5 + $0x170] ss:$8 sps:$4 sm:$0xff]   ;;  %v1170_v4 = vld [vmem:[#allocation5 + $0x184] ss:$8 sps:$4 sm:$0xff]  }
  0x62   :  { %503 = vmatprep.subr.bf16.mxu0 %v1114_v12  ;;  %v1168_v5 = vld [vmem:[#allocation5 + $0x180] ss:$8 sps:$4 sm:$0xff]   ;;  %v1173_v6 = vld [vmem:[#allocation5 + $0x194] ss:$8 sps:$4 sm:$0xff]   ;;  %v1171_v7 = vld [vmem:[#allocation5 + $0x190] ss:$8 sps:$4 sm:$0xff]  }
  0x63   :  { %1031 = vmatpush3.bf16.msra.mxu1 %v1199_v41  ;;  %v1176_v8 = vld [vmem:[#allocation5 + $0x1a4] ss:$8 sps:$4 sm:$0xff]   ;;  %v1174_v9 = vld [vmem:[#allocation5 + $0x1a0] ss:$8 sps:$4 sm:$0xff]   ;;  %v1179_v10 = vld [vmem:[#allocation5 + $0x1b4] ss:$8 sps:$4 sm:$0xff]  }
  0x64   :  { %1032 = vmatprep.subr.bf16.mxu1 %v1200_v42  ;;  %v1177_v11 = vld [vmem:[#allocation5 + $0x1b0] ss:$8 sps:$4 sm:$0xff]   ;;  %v1182_v12 = vld [vmem:[#allocation5 + $0x1c4] ss:$8 sps:$4 sm:$0xff]   ;;  %v1180_v13 = vld [vmem:[#allocation5 + $0x1c0] ss:$8 sps:$4 sm:$0xff]  }
  0x65   :  { %504 = vmatpush1.bf16.msra.mxu0 %v1116_v16  ;;  %v1185_v14 = vld [vmem:[#allocation5 + $0x1d4] ss:$8 sps:$4 sm:$0xff]   ;;  %v1183_v15 = vld [vmem:[#allocation5 + $0x1d0] ss:$8 sps:$4 sm:$0xff]   ;;  %v1188_v16 = vld [vmem:[#allocation5 + $0x1e4] ss:$8 sps:$4 sm:$0xff]  }
  0x66   :  { %505 = vmatprep.subr.bf16.mxu0 %v1117_v17  ;;  %v1186_v17 = vld [vmem:[#allocation5 + $0x1e0] ss:$8 sps:$4 sm:$0xff]  }
  0x67   :  { %1033 = vmatpush3.bf16.msra.mxu1 %v1201_v49  ;;  %v159_v32 = vld [vmem:[%s1475_s2] sm:$0x3] }
  0x68   :  { %1034 = vmatprep.subr.bf16.mxu1 %v1202_v50  ;;  %v1208_v50 = vld [vmem:[#allocation8] sm:$0xff]  }
  0x69   :  { %506 = vmatpush1.bf16.msra.mxu0 %v1119_v18  ;;  %v1191_v18 = vld [vmem:[#allocation5 + $0x1f4] ss:$8 sps:$4 sm:$0xff]  }
  0x6a   :  { %507 = vmatprep.subr.bf16.mxu0 %v1120_v19  ;;  %v1189_v19 = vld [vmem:[#allocation5 + $0x1f0] ss:$8 sps:$4 sm:$0xff]  }
  0x6d   :  { %508 = vmatpush1.bf16.msra.mxu0 %v1122_v20  ;;  %v85_v20 = vld [vmem:[#allocation2 + $0x10] sm:$0xff] }
  0x6e   :  { %509 = vmatprep.subr.bf16.mxu0 %v1123_v21  ;;  %v89_v21 = vld [vmem:[#allocation2 + $0x30] sm:$0xff] }
  0x71   :  { %510 = vmatpush1.bf16.msra.mxu0 %v1125_v22  ;;  %v93_v22 = vpack.c.bf16 %v89_v21, %v85_v20 }
  0x72   :  { %511 = vmatprep.subr.bf16.mxu0 %v1126_v23  ;;  %v1203_v23 = vld [vmem:[#allocation7 + $0x28] sm:$0xff]  }
  0x73   :  { %1035 = vmatpush3.bf16.msra.mxu1 %v1203_v23 }
  0x75   :  { %512 = vmatpush1.bf16.msra.mxu0 %v1128_v24  ;;  %v1204_v24 = vld [vmem:[#allocation7 + $0x70] sm:$0xff]  }
  0x76   :  { %513 = vmatprep.subr.bf16.mxu0 %v1129_v25  ;;  %v1205_v25 = vld [vmem:[#allocation7 + $0x30] sm:$0xff]   ;;  %1036 = vmatprep.subr.bf16.mxu1 %v1204_v24 }
  0x77   :  { %1037 = vmatpush3.bf16.msra.mxu1 %v1205_v25 }
  0x79   :  { %514 = vmatpush1.bf16.msra.mxu0 %v1131_v26  ;;  %v1206_v26 = vld [vmem:[#allocation7 + $0x78] sm:$0xff]  }
  0x7a   :  { %515 = vmatprep.subr.bf16.mxu0 %v1132_v27  ;;  %v1207_v27 = vld [vmem:[#allocation7 + $0x38] sm:$0xff]   ;;  %1038 = vmatprep.subr.bf16.mxu1 %v1206_v26 }
  0x7b   :  { %1039 = vmatpush3.bf16.msra.mxu1 %v1207_v27 }
  0x7d   :  { %516 = vmatpush1.bf16.msra.mxu0 %v1134_v28  ;;  %v1352_v28 = vmov 0.0  }
  0x7e   :  { %517 = vmatprep.subr.bf16.mxu0 %v1135_v29  ;;  %1055 = vmatprep.subr.bf16.mxu1 %v1352_v28  ;;  %v161_v29 = vlaneseq }
  0x80   :  { %v162_v30 = vshrl.u32 %v161_v29, 7 }
  0x81   :  { %518 = vmatpush1.bf16.msra.mxu0 %v1137_v35 }
  0x82   :  { %519 = vmatprep.subr.bf16.mxu0 %v1138_v36  ;;  %v163_v31 = vsub.s32 0, %v162_v30  ;;  %v167_v33 = vsub.s32 1, %v162_v30 }
  0x84   :  { %v164_v34 = vrot.slane %v159_v32, %v163_v31  ;;  %v168_v35 = vrot.slane %v159_v32, %v167_v33 }
  0x85   :  { %520 = vmatpush1.bf16.msra.mxu0 %v1140_v37 }
  0x86   :  { %521 = vmatprep.subr.bf16.mxu0 %v1141_v40 }
  0x89   :  { %522 = vmatpush1.bf16.msra.mxu0 %v1143_v43 }
  0x8a   :  { %534 = vmatprep.subr.bf16.mxu0 %v1146_v46 }
  0x8c   :  { %524 = vmatmul.mubr.bf16.vlgmr.msra.gmra.mrb[0].mxu0 %v91_v52  ;;  %v1210_v52 = vld [vmem:[#allocation8 + $0x10] sm:$0xff]  }
  0x8d   :  { %535 = vmatpush1.bf16.msra.mxu0 %v1144_v51  ;;  %566 = vmatprep.mubr.bf16.mxu0 %v94_v54  ;;  %v1209_v51 = vld [vmem:[#allocation8 + $0x8] sm:$0xff]   ;;  %v1212_v54 = vld [vmem:[#allocation8 + $0x20] sm:$0xff]  }
  0x8e   :  { %536 = vmatprep.subr.bf16.mxu0 %v1149_v53  ;;  %v1211_v53 = vld [vmem:[#allocation8 + $0x18] sm:$0xff]  }
  0x91   :  { %537 = vmatpush1.bf16.msra.mxu0 %v1147_v55  ;;  %v1213_v55 = vld [vmem:[#allocation8 + $0x28] sm:$0xff]  }
  0x92   :  { %538 = vmatprep.subr.bf16.mxu0 %v1152_v56  ;;  %v1214_v56 = vld [vmem:[#allocation8 + $0x30] sm:$0xff]  }
  0x95   :  { %539 = vmatpush1.bf16.msra.mxu0 %v1150_v57  ;;  %v1215_v57 = vld [vmem:[#allocation8 + $0x38] sm:$0xff]  }
  0x96   :  { %540 = vmatprep.subr.bf16.mxu0 %v1155_v58 }
  0x99   :  { %541 = vmatpush1.bf16.msra.mxu0 %v1153_v59  ;;  %v989_v59 = vld [vmem:[%s1477_s4] ss:$0 sm:$0xff]  ;;  %s1354_s4 = smov [#allocation10]  }
  0x9a   :  { %542 = vmatprep.subr.bf16.mxu0 %v1158_v60 }
  0x9d   :  { %543 = vmatpush1.bf16.msra.mxu0 %v1156_v61 }
  0x9e   :  { %544 = vmatprep.subr.bf16.mxu0 %v1161_v62 }
  0xa1   :  { %545 = vmatpush1.bf16.msra.mxu0 %v1159_v63 }
  0xa2   :  { %546 = vmatprep.subr.bf16.mxu0 %v1164_v0 }
  0xa5   :  { %547 = vmatpush1.bf16.msra.mxu0 %v1162_v1 }
  0xa6   :  { %548 = vmatprep.subr.bf16.mxu0 %v1167_v2 }
  0xa9   :  { %549 = vmatpush1.bf16.msra.mxu0 %v1165_v3 }
  0xaa   :  { %550 = vmatprep.subr.bf16.mxu0 %v1170_v4 }
  0xad   :  { %551 = vmatpush1.bf16.msra.mxu0 %v1168_v5 }
  0xae   :  { %552 = vmatprep.subr.bf16.mxu0 %v1173_v6  ;;  %v1006_v6 = vld [vmem:[%s1479_s6] ss:$0 sm:$0xff]  ;;  %s911_s6 = sshll.u32 %s1354_s4, 4  ;;  %s912_s6 = int_to_ptr.vmem [resolvable:$true] %s911_s6 }
  0xaf   :  { %s1312_s9 = scalar_lea.vmem %s912_s6, 128  ;;  %p1317_p5 = scmp.lt.s32.totalorder %s912_s6, %s912_s6 }
  0xb0   :  { %p1313_p4 = scmp.ne.s32.totalorder %s912_s6, %s1312_s9  ;;  %p1318_p6 = scmp.lt.s32.totalorder %s1312_s9, %s1312_s9 }
  0xb1   :  { %553 = vmatpush1.bf16.msra.mxu0 %v1171_v7 }
  0xb2   :  { %554 = vmatprep.subr.bf16.mxu0 %v1176_v8  ;;  %p1319_p7 = por %p1318_p6, %p1317_p5 }
  0xb4   :  { %p1320_p8 = pnand %p1319_p7, %p1313_p4 }
  0xb5   :  { %555 = vmatpush1.bf16.msra.mxu0 %v1174_v9 }
  0xb6   :  { %556 = vmatprep.subr.bf16.mxu0 %v1179_v10 }
  0xb9   :  { %557 = vmatpush1.bf16.msra.mxu0 %v1177_v11 }
  0xba   :  { %558 = vmatprep.subr.bf16.mxu0 %v1182_v12 }
  0xbd   :  { %559 = vmatpush1.bf16.msra.mxu0 %v1180_v13 }
  0xbe   :  { %560 = vmatprep.subr.bf16.mxu0 %v1185_v14 }
  0xc1   :  { %561 = vmatpush1.bf16.msra.mxu0 %v1183_v15 }
  0xc2   :  { %562 = vmatprep.subr.bf16.mxu0 %v1188_v16 }
  0xc5   :  { %563 = vmatpush1.bf16.msra.mxu0 %v1186_v17 }
  0xc6   :  { %564 = vmatprep.subr.bf16.mxu0 %v1191_v18 }
  0xc9   :  { %565 = vmatpush1.bf16.msra.mxu0 %v1189_v19 }
  0xcc   :  { %567 = vmatmul.mubr.bf16.vlgmr.msra.gmra.mrb[0].mxu0 %v93_v22 }
 0x19f   :  { %v568_v36 = vpop.f32.mrb[0].mxu0 }
 0x1a0   :  { %v1075_v37 = vadd.f32 %v568_v36, %v164_v34  ;;  %v570_v38 = vpop.f32.mrb[1].mxu0 }
 0x1a1   :  { %v1076_v39 = vadd.f32 %v570_v38, %v168_v35  ;;  %v572_v40 = vpop.f32.mrb[2].mxu0 }
 0x1a2   :  { %v1077_v41 = vadd.f32 %v572_v40, %v164_v34  ;;  %v574_v42 = vpop.f32.mrb[3].mxu0  ;;  %v577_v44 = vmax.f32 %v1075_v37, 0.0 }
 0x1a3   :  { %v1078_v43 = vadd.f32 %v574_v42, %v168_v35  ;;  %v578_v46 = vmax.f32 %v1076_v39, 0.0 }
 0x1a4   :  { %v579_v45 = vmax.f32 %v1077_v41, 0.0 }
 0x1a5   :  { %v580_v47 = vmax.f32 %v1078_v43, 0.0 }
 0x1a6   :  { %v581_v48 = vpack.c.bf16 %v579_v45, %v577_v44 }
 0x1a7   :  { %v582_v49 = vpack.c.bf16 %v580_v47, %v578_v46 }
 0x1a9   :  { %750 = vmatprep.mubr.bf16.mxu1 %v582_v49 }
 0x1aa   :  { %751 = vmatmul.mubr.bf16.vlgmr.msra.gmra.mrb[0].mxu1 %v581_v48 }
 0x1ab   :  { %1056 = vmatpush3.bf16.msra.mxu1 %v1208_v50  ;;  %1071 = vmatprep.mubr.msk.bf16.mxu1 %vm1353_vm0, %v1352_v28 }
 0x1ac   :  { %1057 = vmatprep.subr.bf16.mxu1 %v1352_v28 }
 0x1af   :  { %1058 = vmatpush3.bf16.msra.mxu1 %v1209_v51 }
 0x1b0   :  { %1059 = vmatprep.subr.bf16.mxu1 %v1352_v28 }
 0x1b3   :  { %1060 = vmatpush3.bf16.msra.mxu1 %v1210_v52 }
 0x1b4   :  { %1061 = vmatprep.subr.bf16.mxu1 %v1352_v28 }
 0x1b7   :  { %1062 = vmatpush3.bf16.msra.mxu1 %v1211_v53 }
 0x1b8   :  { %1063 = vmatprep.subr.bf16.mxu1 %v1352_v28 }
 0x1bb   :  { %1064 = vmatpush3.bf16.msra.mxu1 %v1212_v54 }
 0x1bc   :  { %1065 = vmatprep.subr.bf16.mxu1 %v1352_v28 }
 0x1bf   :  { %1066 = vmatpush3.bf16.msra.mxu1 %v1213_v55 }
 0x1c0   :  { %1067 = vmatprep.subr.bf16.mxu1 %v1352_v28 }
 0x1c3   :  { %1068 = vmatpush3.bf16.msra.mxu1 %v1214_v56 }
 0x1c4   :  { %1069 = vmatprep.subr.bf16.mxu1 %v1352_v28 }
 0x1c7   :  { %1070 = vmatpush3.bf16.msra.mxu1 %v1215_v57 }
 0x27d   :  { %v1040_v58 = vpop.f32.mrb[0].mxu1 }
 0x27e   :  { %v1041_v60 = vpop.f32.mrb[1].mxu1 }
 0x27f   :  { %v1042_v61 = vadd.f32 %v1041_v60, %v1040_v58  ;;  %v1043_v62 = vpop.f32.mrb[2].mxu1 }
 0x280   :  { %v1044_v63 = vpop.f32.mrb[3].mxu1 }
 0x281   :  { %v753_v0 = vadd.f32 %v1042_v61, %v989_v59  ;;  %v1045_v1 = vadd.f32 %v1044_v63, %v1043_v62 }
 0x283   :  { %v756_v2 = vadd.f32 %v1045_v1, %v989_v59  ;;  %v759_v3 = vmax.f32 %v753_v0, 0.0 }
 0x285   :  { %v760_v4 = vmax.f32 %v756_v2, 0.0 }
 0x287   :  { %v761_v5 = vpack.c.bf16 %v760_v4, %v759_v3 }
 0x289   :  { %1072 = vmatmul.mubr.bf16.vlgmr.msra.gmra.mrb[4].mxu1 %v761_v5 }
 0x35c   :  { %v867_v7 = vpop.f32.mrb[4].mxu1 }
 0x35d   :  { %v868_v8 = vadd.f32 %v1006_v6, %v867_v7  ;;  %v1073_v9 = vpop.f32.mrb[5].mxu1 }
 0x35e   :  { %v870_v10 = vpop.f32.mrb[6].mxu1 }
 0x35f   :  { %874 = vmax.xlane.f32.xlu0 %v868_v8  ;;  %v1074_v11 = vpop.f32.mrb[7].mxu1  ;;  %v871_v12 = vadd.f32 %v1006_v6, %v870_v10 }
 0x363   :  { %876 = vmax.xlane.f32.xlu0 %v871_v12 }
 0x3ec   :  { %v875_v13 = vpop.xlane.xlu0 %874 }
 0x3ed   :  { %v878_v14 = vsub.f32 %v868_v8, %v875_v13 }
 0x3ef   :  { %v880_v15 = vmul.f32 1.442695, %v878_v14 }
 0x3f0   :  { %v877_v16 = vpop.xlane.xlu0 %876 }
 0x3f1   :  { %v879_v17 = vsub.f32 %v871_v12, %v877_v16  ;;  %1216 = vpow2.f32 %v880_v15 }
 0x3f3   :  { %v882_v18 = vmul.f32 1.442695, %v879_v17 }
 0x3f5   :  { %1218 = vpow2.f32 %v882_v18 }
 0x3fb   :  { %v1217_v19 = vpop.eup %1216 }
 0x3fc   :  { %884 = vadd.xlane.f32.xlu1 %v1217_v19 }
 0x3ff   :  { %v1219_v20 = vpop.eup %1218 }
 0x400   :  { %886 = vadd.xlane.f32.xlu1 %v1219_v20 }
 0x489   :  { %v885_v21 = vpop.xlane.xlu1 %884 }
 0x48a   :  { %1220 = vlog2.f32 %v885_v21 }
 0x48d   :  { %v887_v22 = vpop.xlane.xlu1 %886 }
 0x48e   :  { %1222 = vlog2.f32 %v887_v22 }
 0x494   :  { %v1221_v23 = vpop.eup %1220 }
 0x495   :  { %v889_v24 = vmul.f32 0.6931472, %v1221_v23 }
 0x497   :  { %v892_v26 = vadd.f32 %v889_v24, %v875_v13 }
 0x498   :  { %v1223_v25 = vpop.eup %1222 }
 0x499   :  { %v891_v27 = vmul.f32 0.6931472, %v1223_v25  ;;  %v894_v29 = vsub.f32 %v868_v8, %v892_v26 }
 0x49b   :  { %v893_v28 = vadd.f32 %v891_v27, %v877_v16 }
 0x49d   :  { %v895_v30 = vsub.f32 %v871_v12, %v893_v28 }
 0x49f   :  { %v1022_v31 = vpack.c.bf16 %v895_v30, %v894_v29 }
 0x4a1   :  { %1023 = vst [vmem:[#allocation10] sm:$0xff] %v1022_v31  }
 0x4a2   :  { %1323 = shalt.err (!%p1320_p8)
}
 0x4a3   :  { %s1324_s12 = scalar_lea.hbm %s1480_s7, 128 }
 0x4a4   :  { %p1325_p9 = scmp.ne.s32.totalorder %s1480_s7, %s1324_s12  ;;  %p1328_p10 = scmp.lt.u32.totalorder %s1324_s12, %s1480_s7 }
 0x4a6   :  { %p1330_p11 = pnand %p1328_p10, %p1325_p9 }
 0x4a8   :  { %1333 = shalt.err (!%p1330_p11)
}
 0x4a9   :  { %917 = dma.vmem_to_hbm [thread:$0]  %s912_s6, 128, %s1480_s7, [#allocation4], %s1349_s0, %s1349_s0, %s1350_s15  }
 0x4aa   :  { %1340 = dma.done.wait [#allocation4], 128  }
 0x4ab   :  { %1341 = vsyncadd [#allocation4], 4294967168 }
 0x4ac   :  { %921 = vsyncpa [#allocation3], 1 }
 0x4ad   :  { %922 = vsyncpa [#allocation6], 1 }
 0x4ae   :  { %923 = vsyncpa [#allocation9], 1 }
 0x4af   :  { %924 = vsyncpa [#allocation4], 1 }

</bundles_post_ra>
